<compile_context>
chip_gen: v7x
topology: tpu7x:2x2x1
jax: 0.10.0
libtpu: 0.0.40
codegen_flags: <defaults>
</compile_context>

<pallas_src>
import functools

import numpy as np
import jax
import jax.numpy as jnp
from jax.experimental import pallas as pl
from jax.experimental.pallas import tpu as pltpu


ACT_DTYPE = jnp.bfloat16   # storage dtype for activations / weights


# --------------------------------------------------------------------------
# In-kernel helpers
# --------------------------------------------------------------------------
def _elu(x):
    """ELU(alpha=1) on an f32 array.

    expm1(x) is evaluated as tanh(x/2) * (exp(x) + 1): mathematically identical,
    keeps full relative accuracy near 0 (unlike exp(x) - 1) and only uses ops
    (exp, tanh) with guaranteed Mosaic lowerings.  Both hit the EUP slot, which
    is free next to the MXU / DMA bound work in these kernels.
    """
    xn = jnp.minimum(x, 0.0)                       # keep unselected branch finite
    em1 = jnp.tanh(xn * 0.5) * (jnp.exp(xn) + 1.0)
    return jnp.where(x > 0, x, em1)


# --------------------------------------------------------------------------
# Kernels
# --------------------------------------------------------------------------
def _conv_s2_kernel(xe_ref, xo_ref, w_ref, b_ref, o_ref, *, l_out, post_elu):
    """Stride-2 Conv1d (K=4, pad=1) via polyphase even/odd inputs, + bias [+ELU].

    xe/xo: (Cin, l_out+1) bf16 (even / odd phases of the padded input)
    w:     (4, Cout, Cin) bf16   b: (Cout, 1) f32   out: (Cout, l_out) bf16
    """
    xe = xe_ref[...]
    xo = xo_ref[...]
    acc = jnp.dot(w_ref[0], xe[:, :l_out], preferred_element_type=jnp.float32)
    acc += jnp.dot(w_ref[1], xo[:, :l_out], preferred_element_type=jnp.float32)
    acc += jnp.dot(w_ref[2], xe[:, 1:l_out + 1], preferred_element_type=jnp.float32)
    acc += jnp.dot(w_ref[3], xo[:, 1:l_out + 1], preferred_element_type=jnp.float32)
    out = acc + b_ref[...]
    if post_elu:
        out = _elu(out)
    o_ref[...] = out.astype(o_ref.dtype)


def _conv_s1_kernel(x_ref, w_ref, b_ref, o_ref, xp_scr, *,
                    n_taps, dilation, pad, l_in, l_out, post_elu):
    """Stride-1 Conv1d, fused im2col: K shifted matmuls over a VMEM-padded slab."""
    # Build the halo-padded input in VMEM (no HBM pad / patches materialization).
    xp_scr[...] = jnp.zeros(xp_scr.shape, xp_scr.dtype)
    xp_scr[:, pad:pad + l_in] = x_ref[...]
    xp = xp_scr[...]
    acc = jnp.dot(w_ref[0], xp[:, :l_out], preferred_element_type=jnp.float32)
    for k in range(1, n_taps):
        acc += jnp.dot(w_ref[k], xp[:, k * dilation:k * dilation + l_out],
                       preferred_element_type=jnp.float32)
    out = acc + b_ref[...]
    if post_elu:
        out = _elu(out)
    o_ref[...] = out.astype(o_ref.dtype)


def _resblock_kernel(h_ref, w1_ref, b1_ref, w2_ref, b2_ref, o_ref, xp_scr, *,
                     dil, l_len, final_elu):
    """Fused ResBlock: ELU -> dilated conv3 -> ELU -> conv1x1 -> + residual.

    The intermediate (R, L) activation never leaves VMEM.  Optionally fuses the
    Encoder's trailing ELU (final_elu).
    """
    h = h_ref[...]                               # (C, L) bf16
    h32 = h.astype(jnp.float32)
    he = _elu(h32)                               # pre-activation ELU (f32)

    # Halo-padded pre-activated slab in VMEM.
    xp_scr[...] = jnp.zeros(xp_scr.shape, xp_scr.dtype)
    xp_scr[:, dil:dil + l_len] = he.astype(xp_scr.dtype)
    xp = xp_scr[...]

    # Dilated conv3 (C -> R) + bias + ELU.
    acc = jnp.dot(w1_ref[0], xp[:, :l_len], preferred_element_type=jnp.float32)
    acc += jnp.dot(w1_ref[1], xp[:, dil:dil + l_len],
                   preferred_element_type=jnp.float32)
    acc += jnp.dot(w1_ref[2], xp[:, 2 * dil:2 * dil + l_len],
                   preferred_element_type=jnp.float32)
    t = _elu(acc + b1_ref[...])                  # (R, L) f32, VMEM only

    # 1x1 conv (R -> C) + bias + residual add.
    out = jnp.dot(w2_ref[0], t.astype(w2_ref.dtype),
                  preferred_element_type=jnp.float32)
    out = out + b2_ref[...] + h32
    if final_elu:
        out = _elu(out)
    o_ref[...] = out.astype(o_ref.dtype)


# --------------------------------------------------------------------------
# Pallas-call wrappers (grid over batch, "parallel" semantics)
# --------------------------------------------------------------------------
def _batch_grid_params():
    return pltpu.CompilerParams(dimension_semantics=("parallel",))


def conv1d_stride2(x, w_kco, b_col, *, post_elu):
    """PyTorch Conv1d(Cin, Cout, kernel_size=4, stride=2, padding=1) [+ ELU]."""
    B, Cin, L = x.shape
    K, Cout, Cin2 = w_kco.shape
    assert K == 4 and Cin2 == Cin and L % 2 == 0
    Lout = L // 2
    # Polyphase split of the padded input (done once per layer on HBM; avoids
    # any strided gather or zero-skipping work inside the kernel).
    xp = jnp.pad(x, ((0, 0), (0, 0), (1, 1)))
    xe = xp[:, :, 0::2]                          # (B, Cin, Lout + 1)
    xo = xp[:, :, 1::2]                          # (B, Cin, Lout + 1)
    kern = functools.partial(_conv_s2_kernel, l_out=Lout, post_elu=post_elu)
    return pl.pallas_call(
        kern,
        grid=(B,),
        in_specs=[
            pl.BlockSpec((None, Cin, Lout + 1), lambda bi: (bi, 0, 0)),
            pl.BlockSpec((None, Cin, Lout + 1), lambda bi: (bi, 0, 0)),
            pl.BlockSpec((K, Cout, Cin), lambda bi: (0, 0, 0)),
            pl.BlockSpec((Cout, 1), lambda bi: (0, 0)),
        ],
        out_specs=pl.BlockSpec((None, Cout, Lout), lambda bi: (bi, 0, 0)),
        out_shape=jax.ShapeDtypeStruct((B, Cout, Lout), ACT_DTYPE),
        compiler_params=_batch_grid_params(),
    )(xe, xo, w_kco, b_col)


def conv1d_same(x, w_kco, b_col, *, padding, dilation=1, post_elu=False):
    """PyTorch Conv1d(Cin, Cout, kernel_size=K, stride=1, padding, dilation)."""
    B, Cin, L = x.shape
    K, Cout, Cin2 = w_kco.shape
    assert Cin2 == Cin
    Lout = L + 2 * padding - dilation * (K - 1)
    kern = functools.partial(_conv_s1_kernel, n_taps=K, dilation=dilation,
                             pad=padding, l_in=L, l_out=Lout, post_elu=post_elu)
    return pl.pallas_call(
        kern,
        grid=(B,),
        in_specs=[
            pl.BlockSpec((None, Cin, L), lambda bi: (bi, 0, 0)),
            pl.BlockSpec((K, Cout, Cin), lambda bi: (0, 0, 0)),
            pl.BlockSpec((Cout, 1), lambda bi: (0, 0)),
        ],
        out_specs=pl.BlockSpec((None, Cout, Lout), lambda bi: (bi, 0, 0)),
        out_shape=jax.ShapeDtypeStruct((B, Cout, Lout), ACT_DTYPE),
        scratch_shapes=[pltpu.VMEM((Cin, L + 2 * padding), ACT_DTYPE)],
        compiler_params=_batch_grid_params(),
    )(x, w_kco, b_col)


def resblock_fused(h, w1, b1, w2, b2, *, dilation, final_elu):
    """One ResBlock as a single pallas_call (two convs + ELUs + residual)."""
    B, C, L = h.shape
    K1, R, C2 = w1.shape
    K2, C3, R2 = w2.shape
    assert K1 == 3 and K2 == 1 and C2 == C and C3 == C and R2 == R
    kern = functools.partial(_resblock_kernel, dil=dilation, l_len=L,
                             final_elu=final_elu)
    return pl.pallas_call(
        kern,
        grid=(B,),
        in_specs=[
            pl.BlockSpec((None, C, L), lambda bi: (bi, 0, 0)),
            pl.BlockSpec((K1, R, C), lambda bi: (0, 0, 0)),
            pl.BlockSpec((R, 1), lambda bi: (0, 0)),
            pl.BlockSpec((K2, C, R), lambda bi: (0, 0, 0)),
            pl.BlockSpec((C, 1), lambda bi: (0, 0)),
        ],
        out_specs=pl.BlockSpec((None, C, L), lambda bi: (bi, 0, 0)),
        out_shape=jax.ShapeDtypeStruct((B, C, L), ACT_DTYPE),
        scratch_shapes=[pltpu.VMEM((C, L + 2 * dilation), ACT_DTYPE)],
        compiler_params=_batch_grid_params(),
    )(h, w1, b1, w2, b2)


# --------------------------------------------------------------------------
# Encoder forward
# --------------------------------------------------------------------------
def encoder_forward(kp, x):
    """Encoder.forward: x (B, channel, L) -> (B, channel, L//4)."""
    n_res = len(kp['res'])
    h = conv1d_stride2(x, kp['c0_w'], kp['c0_b'], post_elu=True)
    h = conv1d_stride2(h, kp['c1_w'], kp['c1_b'], post_elu=True)
    # Trailing encoder ELU fuses into this conv when there are no ResBlocks.
    h = conv1d_same(h, kp['c2_w'], kp['c2_b'], padding=1,
                    post_elu=(n_res == 0))
    for i, (w1, b1, w2, b2) in enumerate(kp['res']):
        dil = 2 ** i
        h = resblock_fused(h, w1, b1, w2, b2, dilation=dil,
                           final_elu=(i == n_res - 1))
    return h


# --------------------------------------------------------------------------
# Params (PyTorch layout) + kernel-layout preparation
# --------------------------------------------------------------------------
def init_encoder_params(key, *, channel, res_channel, n_res_blocks):
    keys = iter(jax.random.split(key, 8 + 4 * n_res_blocks))

    def nrm(shape, scale=0.1):
        return scale * jax.random.normal(next(keys), shape, dtype=jnp.float32)

    C, R = channel, res_channel
    return {
        'c0_w': nrm((C // 2, C, 4)), 'c0_b': nrm((C // 2,)),
        'c1_w': nrm((C, C // 2, 4)), 'c1_b': nrm((C,)),
        'c2_w': nrm((C, C, 3)),      'c2_b': nrm((C,)),
        'res': [(nrm((R, C, 3)), nrm((R,)), nrm((C, R, 1)), nrm((C,)))
                for _ in range(n_res_blocks)],
    }


def prepare_kernel_params(p):
    """One-time relayout: weights (Cout,Cin,K)->(K,Cout,Cin) bf16, bias (Cout,1) f32."""
    def w_prep(w):
        return jnp.transpose(jnp.asarray(w, jnp.float32), (2, 0, 1)).astype(ACT_DTYPE)

    def b_prep(b):
        return jnp.asarray(b, jnp.float32).reshape(-1, 1)

    return {
        'c0_w': w_prep(p['c0_w']), 'c0_b': b_prep(p['c0_b']),
        'c1_w': w_prep(p['c1_w']), 'c1_b': b_prep(p['c1_b']),
        'c2_w': w_prep(p['c2_w']), 'c2_b': b_prep(p['c2_b']),
        'res': [(w_prep(w1), b_prep(b1), w_prep(w2), b_prep(b2))
                for (w1, b1, w2, b2) in p['res']],
    }


# --------------------------------------------------------------------------
# Pure-JAX reference (f32) for correctness checking
# --------------------------------------------------------------------------
def encoder_reference(p, x):
    def conv(h, w, b, *, stride=1, padding=0, dilation=1):
        out = jax.lax.conv_general_dilated(
            h, w, window_strides=(stride,), padding=[(padding, padding)],
            rhs_dilation=(dilation,), dimension_numbers=('NCH', 'OIH', 'NCH'),
            precision=jax.lax.Precision.HIGHEST)
        return out + b[None, :, None]

    def elu(v):
        return jnp.where(v > 0, v, jnp.expm1(jnp.minimum(v, 0.0)))

    h = elu(conv(x, p['c0_w'], p['c0_b'], stride=2, padding=1))
    h = elu(conv(h, p['c1_w'], p['c1_b'], stride=2, padding=1))
    h = conv(h, p['c2_w'], p['c2_b'], padding=1)
    for i, (w1, b1, w2, b2) in enumerate(p['res']):
        d = 2 ** i
        t = elu(conv(elu(h), w1, b1, padding=d, dilation=d))
        h = conv(t, w2, b2) + h
    return elu(h)


# --------------------------------------------------------------------------
if __name__ == "__main__":
    channel, res_channel, n_res_blocks = 16, 8, 2
    B, L = 2, 64

    key = jax.random.PRNGKey(0)
    pkey, xkey = jax.random.split(key)
    params = init_encoder_params(pkey, channel=channel, res_channel=res_channel,
                                 n_res_blocks=n_res_blocks)
    x = jax.random.normal(xkey, (B, channel, L), dtype=jnp.float32)

    kparams = prepare_kernel_params(params)
    x_act = x.astype(ACT_DTYPE)

    fwd = jax.jit(encoder_forward)
    out = fwd(kparams, x_act)
    jax.block_until_ready(out)

    # Reference in f32 from the same bf16-rounded operands.
    def round_bf16(a):
        return jnp.asarray(a, jnp.float32).astype(jnp.bfloat16).astype(jnp.float32)

    params_r = jax.tree_util.tree_map(round_bf16, params)
    ref = encoder_reference(params_r, round_bf16(x))

    out32 = np.asarray(out.astype(jnp.float32))
    ref32 = np.asarray(ref)

    assert out.shape == (B, channel, L // 4), out.shape
    assert np.all(np.isfinite(out32))
    max_err = float(np.max(np.abs(out32 - ref32)))
    assert max_err < 0.15, f"max abs err vs reference: {max_err}"
    print("KERNEL_OK")
</pallas_src>

<mosaic_0001>
module attributes {stable_mosaic.version = 11 : i64} {
  func.func @_conv_s2_kernel(%arg0: i32, %arg1: memref<1x16x33xbf16, #tpu.memory_space<vmem>>, %arg2: memref<1x16x33xbf16, #tpu.memory_space<vmem>>, %arg3: memref<4x8x16xbf16, #tpu.memory_space<vmem>>, %arg4: memref<8x1xf32, #tpu.memory_space<vmem>>, %arg5: memref<1x8x32xbf16, #tpu.memory_space<vmem>>) attributes {dimension_semantics = [#tpu.dimension_semantics<parallel>], iteration_bounds = array<i64: 2>, scalar_prefetch = 0 : i64, scratch_operands = 0 : i64, tpu.core_type = #tpu.core_type<tc>, window_params = [{transform_indices = @transform_0, window_bounds = array<i64: 1, 16, 33>}, {transform_indices = @transform_1, window_bounds = array<i64: 1, 16, 33>}, {pipeline_mode = #tpu.pipeline_mode<synchronous>, transform_indices = @transform_2, window_bounds = array<i64: 4, 8, 16>}, {pipeline_mode = #tpu.pipeline_mode<synchronous>, transform_indices = @transform_3, window_bounds = array<i64: 8, 1>}, {transform_indices = @transform_4, window_bounds = array<i64: 1, 8, 32>}]} {
    %c0 = arith.constant 0 : index
    %c0_0 = arith.constant 0 : index
    %c0_1 = arith.constant 0 : index
    %0 = vector.load %arg1[%c0, %c0_0, %c0_1] : memref<1x16x33xbf16, #tpu.memory_space<vmem>>, vector<1x16x33xbf16>
    %1 = vector.shape_cast %0 : vector<1x16x33xbf16> to vector<16x33xbf16>
    %c0_2 = arith.constant 0 : index
    %c0_3 = arith.constant 0 : index
    %c0_4 = arith.constant 0 : index
    %2 = vector.load %arg2[%c0_2, %c0_3, %c0_4] : memref<1x16x33xbf16, #tpu.memory_space<vmem>>, vector<1x16x33xbf16>
    %3 = vector.shape_cast %2 : vector<1x16x33xbf16> to vector<16x33xbf16>
    %c0_5 = arith.constant 0 : index
    %c0_6 = arith.constant 0 : index
    %c0_7 = arith.constant 0 : index
    %4 = vector.load %arg3[%c0_5, %c0_6, %c0_7] : memref<4x8x16xbf16, #tpu.memory_space<vmem>>, vector<1x8x16xbf16>
    %5 = vector.shape_cast %4 : vector<1x8x16xbf16> to vector<8x16xbf16>
    %6 = vector.extract_strided_slice %1 {offsets = [0, 0], sizes = [16, 32], strides = [1, 1]} : vector<16x33xbf16> to vector<16x32xbf16>
    %cst = arith.constant dense<0.000000e+00> : vector<8x32xf32>
    %7 = tpu.matmul %5, %6, %cst {dimension_numbers = #tpu.dot_dimension_numbers<[1], [0], [0], [1], [0, 0, 1, 1], [], []>} : vector<8x16xbf16>, vector<16x32xbf16>, vector<8x32xf32> -> vector<8x32xf32>
    %c1 = arith.constant 1 : index
    %c0_8 = arith.constant 0 : index
    %c0_9 = arith.constant 0 : index
    %8 = vector.load %arg3[%c1, %c0_8, %c0_9] : memref<4x8x16xbf16, #tpu.memory_space<vmem>>, vector<1x8x16xbf16>
    %9 = vector.shape_cast %8 : vector<1x8x16xbf16> to vector<8x16xbf16>
    %10 = vector.extract_strided_slice %3 {offsets = [0, 0], sizes = [16, 32], strides = [1, 1]} : vector<16x33xbf16> to vector<16x32xbf16>
    %cst_10 = arith.constant dense<0.000000e+00> : vector<8x32xf32>
    %11 = tpu.matmul %9, %10, %cst_10 {dimension_numbers = #tpu.dot_dimension_numbers<[1], [0], [0], [1], [0, 0, 1, 1], [], []>} : vector<8x16xbf16>, vector<16x32xbf16>, vector<8x32xf32> -> vector<8x32xf32>
    %12 = arith.addf %7, %11 : vector<8x32xf32>
    %c2 = arith.constant 2 : index
    %c0_11 = arith.constant 0 : index
    %c0_12 = arith.constant 0 : index
    %13 = vector.load %arg3[%c2, %c0_11, %c0_12] : memref<4x8x16xbf16, #tpu.memory_space<vmem>>, vector<1x8x16xbf16>
    %14 = vector.shape_cast %13 : vector<1x8x16xbf16> to vector<8x16xbf16>
    %15 = vector.extract_strided_slice %1 {offsets = [0, 1], sizes = [16, 32], strides = [1, 1]} : vector<16x33xbf16> to vector<16x32xbf16>
    %cst_13 = arith.constant dense<0.000000e+00> : vector<8x32xf32>
    %16 = tpu.matmul %14, %15, %cst_13 {dimension_numbers = #tpu.dot_dimension_numbers<[1], [0], [0], [1], [0, 0, 1, 1], [], []>} : vector<8x16xbf16>, vector<16x32xbf16>, vector<8x32xf32> -> vector<8x32xf32>
    %17 = arith.addf %12, %16 : vector<8x32xf32>
    %c3 = arith.constant 3 : index
    %c0_14 = arith.constant 0 : index
    %c0_15 = arith.constant 0 : index
    %18 = vector.load %arg3[%c3, %c0_14, %c0_15] : memref<4x8x16xbf16, #tpu.memory_space<vmem>>, vector<1x8x16xbf16>
    %19 = vector.shape_cast %18 : vector<1x8x16xbf16> to vector<8x16xbf16>
    %20 = vector.extract_strided_slice %3 {offsets = [0, 1], sizes = [16, 32], strides = [1, 1]} : vector<16x33xbf16> to vector<16x32xbf16>
    %cst_16 = arith.constant dense<0.000000e+00> : vector<8x32xf32>
    %21 = tpu.matmul %19, %20, %cst_16 {dimension_numbers = #tpu.dot_dimension_numbers<[1], [0], [0], [1], [0, 0, 1, 1], [], []>} : vector<8x16xbf16>, vector<16x32xbf16>, vector<8x32xf32> -> vector<8x32xf32>
    %22 = arith.addf %17, %21 : vector<8x32xf32>
    %c0_17 = arith.constant 0 : index
    %c0_18 = arith.constant 0 : index
    %23 = vector.load %arg4[%c0_17, %c0_18] : memref<8x1xf32, #tpu.memory_space<vmem>>, vector<8x1xf32>
    %24 = vector.broadcast %23 : vector<8x1xf32> to vector<8x32xf32>
    %25 = arith.addf %22, %24 : vector<8x32xf32>
    %cst_19 = arith.constant 0.000000e+00 : f32
    %26 = vector.broadcast %cst_19 : f32 to vector<8x32xf32>
    %27 = arith.minimumf %25, %26 : vector<8x32xf32>
    %cst_20 = arith.constant 5.000000e-01 : f32
    %28 = vector.broadcast %cst_20 : f32 to vector<8x32xf32>
    %29 = arith.mulf %27, %28 : vector<8x32xf32>
    %30 = math.tanh %29 : vector<8x32xf32>
    %31 = math.exp %27 : vector<8x32xf32>
    %cst_21 = arith.constant 1.000000e+00 : f32
    %32 = vector.broadcast %cst_21 : f32 to vector<8x32xf32>
    %33 = arith.addf %31, %32 : vector<8x32xf32>
    %34 = arith.mulf %30, %33 : vector<8x32xf32>
    %cst_22 = arith.constant 0.000000e+00 : f32
    %35 = vector.broadcast %cst_22 : f32 to vector<8x32xf32>
    %36 = arith.cmpf ogt, %25, %35 : vector<8x32xf32>
    %37 = arith.select %36, %25, %34 : vector<8x32xi1>, vector<8x32xf32>
    %38 = arith.truncf %37 : vector<8x32xf32> to vector<8x32xbf16>
    %c0_23 = arith.constant 0 : index
    %c0_24 = arith.constant 0 : index
    %c0_25 = arith.constant 0 : index
    %39 = vector.load %arg5[%c0_23, %c0_24, %c0_25] : memref<1x8x32xbf16, #tpu.memory_space<vmem>>, vector<1x8x32xbf16>
    %40 = vector.shape_cast %39 : vector<1x8x32xbf16> to vector<8x32xbf16>
    %41 = vector.shape_cast %38 : vector<8x32xbf16> to vector<1x8x32xbf16>
    tpu.vector_store %arg5[%c0_23, %c0_24, %c0_25], %41 {strides = array<i32>} : memref<1x8x32xbf16, #tpu.memory_space<vmem>>, vector<1x8x32xbf16>,
    return
  }
  func.func @transform_0(%arg0: i32) -> (i32, i32, i32) {
    %c0_i32 = arith.constant 0 : i32
    %c0_i32_0 = arith.constant 0 : i32
    %c0_i32_1 = arith.constant 0 : i32
    return %arg0, %c0_i32, %c0_i32_0 : i32, i32, i32
  }
  func.func @transform_1(%arg0: i32) -> (i32, i32, i32) {
    %c0_i32 = arith.constant 0 : i32
    %c0_i32_0 = arith.constant 0 : i32
    %c0_i32_1 = arith.constant 0 : i32
    return %arg0, %c0_i32, %c0_i32_0 : i32, i32, i32
  }
  func.func @transform_2(%arg0: i32) -> (i32, i32, i32) {
    %c0_i32 = arith.constant 0 : i32
    %c0_i32_0 = arith.constant 0 : i32
    %c0_i32_1 = arith.constant 0 : i32
    %c0_i32_2 = arith.constant 0 : i32
    return %c0_i32, %c0_i32_0, %c0_i32_1 : i32, i32, i32
  }
  func.func @transform_3(%arg0: i32) -> (i32, i32) {
    %c0_i32 = arith.constant 0 : i32
    %c0_i32_0 = arith.constant 0 : i32
    %c0_i32_1 = arith.constant 0 : i32
    return %c0_i32, %c0_i32_0 : i32, i32
  }
  func.func @transform_4(%arg0: i32) -> (i32, i32, i32) {
    %c0_i32 = arith.constant 0 : i32
    %c0_i32_0 = arith.constant 0 : i32
    %c0_i32_1 = arith.constant 0 : i32
    return %arg0, %c0_i32, %c0_i32_0 : i32, i32, i32
  }
}

module attributes {stable_mosaic.version = 11 : i64} {
  func.func @_conv_s2_kernel(%arg0: i32, %arg1: memref<1x8x17xbf16, #tpu.memory_space<vmem>>, %arg2: memref<1x8x17xbf16, #tpu.memory_space<vmem>>, %arg3: memref<4x16x8xbf16, #tpu.memory_space<vmem>>, %arg4: memref<16x1xf32, #tpu.memory_space<vmem>>, %arg5: memref<1x16x16xbf16, #tpu.memory_space<vmem>>) attributes {dimension_semantics = [#tpu.dimension_semantics<parallel>], iteration_bounds = array<i64: 2>, scalar_prefetch = 0 : i64, scratch_operands = 0 : i64, tpu.core_type = #tpu.core_type<tc>, window_params = [{transform_indices = @transform_0, window_bounds = array<i64: 1, 8, 17>}, {transform_indices = @transform_1, window_bounds = array<i64: 1, 8, 17>}, {pipeline_mode = #tpu.pipeline_mode<synchronous>, transform_indices = @transform_2, window_bounds = array<i64: 4, 16, 8>}, {pipeline_mode = #tpu.pipeline_mode<synchronous>, transform_indices = @transform_3, window_bounds = array<i64: 16, 1>}, {transform_indices = @transform_4, window_bounds = array<i64: 1, 16, 16>}]} {
    %c0 = arith.constant 0 : index
    %c0_0 = arith.constant 0 : index
    %c0_1 = arith.constant 0 : index
    %0 = vector.load %arg1[%c0, %c0_0, %c0_1] : memref<1x8x17xbf16, #tpu.memory_space<vmem>>, vector<1x8x17xbf16>
    %1 = vector.shape_cast %0 : vector<1x8x17xbf16> to vector<8x17xbf16>
    %c0_2 = arith.constant 0 : index
    %c0_3 = arith.constant 0 : index
    %c0_4 = arith.constant 0 : index
    %2 = vector.load %arg2[%c0_2, %c0_3, %c0_4] : memref<1x8x17xbf16, #tpu.memory_space<vmem>>, vector<1x8x17xbf16>
    %3 = vector.shape_cast %2 : vector<1x8x17xbf16> to vector<8x17xbf16>
    %c0_5 = arith.constant 0 : index
    %c0_6 = arith.constant 0 : index
    %c0_7 = arith.constant 0 : index
    %4 = vector.load %arg3[%c0_5, %c0_6, %c0_7] : memref<4x16x8xbf16, #tpu.memory_space<vmem>>, vector<1x16x8xbf16>
    %5 = vector.shape_cast %4 : vector<1x16x8xbf16> to vector<16x8xbf16>
    %6 = vector.extract_strided_slice %1 {offsets = [0, 0], sizes = [8, 16], strides = [1, 1]} : vector<8x17xbf16> to vector<8x16xbf16>
    %cst = arith.constant dense<0.000000e+00> : vector<16x16xf32>
    %7 = tpu.matmul %5, %6, %cst {dimension_numbers = #tpu.dot_dimension_numbers<[1], [0], [0], [1], [0, 0, 1, 1], [], []>} : vector<16x8xbf16>, vector<8x16xbf16>, vector<16x16xf32> -> vector<16x16xf32>
    %c1 = arith.constant 1 : index
    %c0_8 = arith.constant 0 : index
    %c0_9 = arith.constant 0 : index
    %8 = vector.load %arg3[%c1, %c0_8, %c0_9] : memref<4x16x8xbf16, #tpu.memory_space<vmem>>, vector<1x16x8xbf16>
    %9 = vector.shape_cast %8 : vector<1x16x8xbf16> to vector<16x8xbf16>
    %10 = vector.extract_strided_slice %3 {offsets = [0, 0], sizes = [8, 16], strides = [1, 1]} : vector<8x17xbf16> to vector<8x16xbf16>
    %cst_10 = arith.constant dense<0.000000e+00> : vector<16x16xf32>
    %11 = tpu.matmul %9, %10, %cst_10 {dimension_numbers = #tpu.dot_dimension_numbers<[1], [0], [0], [1], [0, 0, 1, 1], [], []>} : vector<16x8xbf16>, vector<8x16xbf16>, vector<16x16xf32> -> vector<16x16xf32>
    %12 = arith.addf %7, %11 : vector<16x16xf32>
    %c2 = arith.constant 2 : index
    %c0_11 = arith.constant 0 : index
    %c0_12 = arith.constant 0 : index
    %13 = vector.load %arg3[%c2, %c0_11, %c0_12] : memref<4x16x8xbf16, #tpu.memory_space<vmem>>, vector<1x16x8xbf16>
    %14 = vector.shape_cast %13 : vector<1x16x8xbf16> to vector<16x8xbf16>
    %15 = vector.extract_strided_slice %1 {offsets = [0, 1], sizes = [8, 16], strides = [1, 1]} : vector<8x17xbf16> to vector<8x16xbf16>
    %cst_13 = arith.constant dense<0.000000e+00> : vector<16x16xf32>
    %16 = tpu.matmul %14, %15, %cst_13 {dimension_numbers = #tpu.dot_dimension_numbers<[1], [0], [0], [1], [0, 0, 1, 1], [], []>} : vector<16x8xbf16>, vector<8x16xbf16>, vector<16x16xf32> -> vector<16x16xf32>
    %17 = arith.addf %12, %16 : vector<16x16xf32>
    %c3 = arith.constant 3 : index
    %c0_14 = arith.constant 0 : index
    %c0_15 = arith.constant 0 : index
    %18 = vector.load %arg3[%c3, %c0_14, %c0_15] : memref<4x16x8xbf16, #tpu.memory_space<vmem>>, vector<1x16x8xbf16>
    %19 = vector.shape_cast %18 : vector<1x16x8xbf16> to vector<16x8xbf16>
    %20 = vector.extract_strided_slice %3 {offsets = [0, 1], sizes = [8, 16], strides = [1, 1]} : vector<8x17xbf16> to vector<8x16xbf16>
    %cst_16 = arith.constant dense<0.000000e+00> : vector<16x16xf32>
    %21 = tpu.matmul %19, %20, %cst_16 {dimension_numbers = #tpu.dot_dimension_numbers<[1], [0], [0], [1], [0, 0, 1, 1], [], []>} : vector<16x8xbf16>, vector<8x16xbf16>, vector<16x16xf32> -> vector<16x16xf32>
    %22 = arith.addf %17, %21 : vector<16x16xf32>
    %c0_17 = arith.constant 0 : index
    %c0_18 = arith.constant 0 : index
    %23 = vector.load %arg4[%c0_17, %c0_18] : memref<16x1xf32, #tpu.memory_space<vmem>>, vector<16x1xf32>
    %24 = vector.broadcast %23 : vector<16x1xf32> to vector<16x16xf32>
    %25 = arith.addf %22, %24 : vector<16x16xf32>
    %cst_19 = arith.constant 0.000000e+00 : f32
    %26 = vector.broadcast %cst_19 : f32 to vector<16x16xf32>
    %27 = arith.minimumf %25, %26 : vector<16x16xf32>
    %cst_20 = arith.constant 5.000000e-01 : f32
    %28 = vector.broadcast %cst_20 : f32 to vector<16x16xf32>
    %29 = arith.mulf %27, %28 : vector<16x16xf32>
    %30 = math.tanh %29 : vector<16x16xf32>
    %31 = math.exp %27 : vector<16x16xf32>
    %cst_21 = arith.constant 1.000000e+00 : f32
    %32 = vector.broadcast %cst_21 : f32 to vector<16x16xf32>
    %33 = arith.addf %31, %32 : vector<16x16xf32>
    %34 = arith.mulf %30, %33 : vector<16x16xf32>
    %cst_22 = arith.constant 0.000000e+00 : f32
    %35 = vector.broadcast %cst_22 : f32 to vector<16x16xf32>
    %36 = arith.cmpf ogt, %25, %35 : vector<16x16xf32>
    %37 = arith.select %36, %25, %34 : vector<16x16xi1>, vector<16x16xf32>
    %38 = arith.truncf %37 : vector<16x16xf32> to vector<16x16xbf16>
    %c0_23 = arith.constant 0 : index
    %c0_24 = arith.constant 0 : index
    %c0_25 = arith.constant 0 : index
    %39 = vector.load %arg5[%c0_23, %c0_24, %c0_25] : memref<1x16x16xbf16, #tpu.memory_space<vmem>>, vector<1x16x16xbf16>
    %40 = vector.shape_cast %39 : vector<1x16x16xbf16> to vector<16x16xbf16>
    %41 = vector.shape_cast %38 : vector<16x16xbf16> to vector<1x16x16xbf16>
    tpu.vector_store %arg5[%c0_23, %c0_24, %c0_25], %41 {strides = array<i32>} : memref<1x16x16xbf16, #tpu.memory_space<vmem>>, vector<1x16x16xbf16>,
    return
  }
  func.func @transform_0(%arg0: i32) -> (i32, i32, i32) {
    %c0_i32 = arith.constant 0 : i32
    %c0_i32_0 = arith.constant 0 : i32
    %c0_i32_1 = arith.constant 0 : i32
    return %arg0, %c0_i32, %c0_i32_0 : i32, i32, i32
  }
  func.func @transform_1(%arg0: i32) -> (i32, i32, i32) {
    %c0_i32 = arith.constant 0 : i32
    %c0_i32_0 = arith.constant 0 : i32
    %c0_i32_1 = arith.constant 0 : i32
    return %arg0, %c0_i32, %c0_i32_0 : i32, i32, i32
  }
  func.func @transform_2(%arg0: i32) -> (i32, i32, i32) {
    %c0_i32 = arith.constant 0 : i32
    %c0_i32_0 = arith.constant 0 : i32
    %c0_i32_1 = arith.constant 0 : i32
    %c0_i32_2 = arith.constant 0 : i32
    return %c0_i32, %c0_i32_0, %c0_i32_1 : i32, i32, i32
  }
  func.func @transform_3(%arg0: i32) -> (i32, i32) {
    %c0_i32 = arith.constant 0 : i32
    %c0_i32_0 = arith.constant 0 : i32
    %c0_i32_1 = arith.constant 0 : i32
    return %c0_i32, %c0_i32_0 : i32, i32
  }
  func.func @transform_4(%arg0: i32) -> (i32, i32, i32) {
    %c0_i32 = arith.constant 0 : i32
    %c0_i32_0 = arith.constant 0 : i32
    %c0_i32_1 = arith.constant 0 : i32
    return %arg0, %c0_i32, %c0_i32_0 : i32, i32, i32
  }
}

module attributes {stable_mosaic.version = 11 : i64} {
  func.func @_conv_s1_kernel(%arg0: i32, %arg1: memref<1x16x16xbf16, #tpu.memory_space<vmem>>, %arg2: memref<3x16x16xbf16, #tpu.memory_space<vmem>>, %arg3: memref<16x1xf32, #tpu.memory_space<vmem>>, %arg4: memref<1x16x16xbf16, #tpu.memory_space<vmem>>, %arg5: memref<16x18xbf16, #tpu.memory_space<vmem>>) attributes {dimension_semantics = [#tpu.dimension_semantics<parallel>], iteration_bounds = array<i64: 2>, scalar_prefetch = 0 : i64, scratch_operands = 1 : i64, tpu.core_type = #tpu.core_type<tc>, window_params = [{transform_indices = @transform_0, window_bounds = array<i64: 1, 16, 16>}, {pipeline_mode = #tpu.pipeline_mode<synchronous>, transform_indices = @transform_1, window_bounds = array<i64: 3, 16, 16>}, {pipeline_mode = #tpu.pipeline_mode<synchronous>, transform_indices = @transform_2, window_bounds = array<i64: 16, 1>}, {transform_indices = @transform_3, window_bounds = array<i64: 1, 16, 16>}]} {
    %cst = arith.constant 0.000000e+00 : bf16
    %0 = vector.broadcast %cst : bf16 to vector<16x18xbf16>
    %c0 = arith.constant 0 : index
    %c0_0 = arith.constant 0 : index
    %1 = vector.load %arg5[%c0, %c0_0] : memref<16x18xbf16, #tpu.memory_space<vmem>>, vector<16x18xbf16>
    tpu.vector_store %arg5[%c0, %c0_0], %0 {strides = array<i32>} : memref<16x18xbf16, #tpu.memory_space<vmem>>, vector<16x18xbf16>,
    %c0_1 = arith.constant 0 : index
    %c0_2 = arith.constant 0 : index
    %c0_3 = arith.constant 0 : index
    %2 = vector.load %arg1[%c0_1, %c0_2, %c0_3] : memref<1x16x16xbf16, #tpu.memory_space<vmem>>, vector<1x16x16xbf16>
    %3 = vector.shape_cast %2 : vector<1x16x16xbf16> to vector<16x16xbf16>
    %c0_4 = arith.constant 0 : index
    %c1 = arith.constant 1 : index
    %4 = vector.load %arg5[%c0_4, %c1] : memref<16x18xbf16, #tpu.memory_space<vmem>>, vector<16x16xbf16>
    tpu.vector_store %arg5[%c0_4, %c1], %3 {strides = array<i32>} : memref<16x18xbf16, #tpu.memory_space<vmem>>, vector<16x16xbf16>,
    %c0_5 = arith.constant 0 : index
    %c0_6 = arith.constant 0 : index
    %5 = vector.load %arg5[%c0_5, %c0_6] : memref<16x18xbf16, #tpu.memory_space<vmem>>, vector<16x18xbf16>
    %c0_7 = arith.constant 0 : index
    %c0_8 = arith.constant 0 : index
    %c0_9 = arith.constant 0 : index
    %6 = vector.load %arg2[%c0_7, %c0_8, %c0_9] : memref<3x16x16xbf16, #tpu.memory_space<vmem>>, vector<1x16x16xbf16>
    %7 = vector.shape_cast %6 : vector<1x16x16xbf16> to vector<16x16xbf16>
    %8 = vector.extract_strided_slice %5 {offsets = [0, 0], sizes = [16, 16], strides = [1, 1]} : vector<16x18xbf16> to vector<16x16xbf16>
    %cst_10 = arith.constant dense<0.000000e+00> : vector<16x16xf32>
    %9 = tpu.matmul %7, %8, %cst_10 {dimension_numbers = #tpu.dot_dimension_numbers<[1], [0], [0], [1], [0, 0, 1, 1], [], []>} : vector<16x16xbf16>, vector<16x16xbf16>, vector<16x16xf32> -> vector<16x16xf32>
    %c1_11 = arith.constant 1 : index
    %c0_12 = arith.constant 0 : index
    %c0_13 = arith.constant 0 : index
    %10 = vector.load %arg2[%c1_11, %c0_12, %c0_13] : memref<3x16x16xbf16, #tpu.memory_space<vmem>>, vector<1x16x16xbf16>
    %11 = vector.shape_cast %10 : vector<1x16x16xbf16> to vector<16x16xbf16>
    %12 = vector.extract_strided_slice %5 {offsets = [0, 1], sizes = [16, 16], strides = [1, 1]} : vector<16x18xbf16> to vector<16x16xbf16>
    %cst_14 = arith.constant dense<0.000000e+00> : vector<16x16xf32>
    %13 = tpu.matmul %11, %12, %cst_14 {dimension_numbers = #tpu.dot_dimension_numbers<[1], [0], [0], [1], [0, 0, 1, 1], [], []>} : vector<16x16xbf16>, vector<16x16xbf16>, vector<16x16xf32> -> vector<16x16xf32>
    %14 = arith.addf %9, %13 : vector<16x16xf32>
    %c2 = arith.constant 2 : index
    %c0_15 = arith.constant 0 : index
    %c0_16 = arith.constant 0 : index
    %15 = vector.load %arg2[%c2, %c0_15, %c0_16] : memref<3x16x16xbf16, #tpu.memory_space<vmem>>, vector<1x16x16xbf16>
    %16 = vector.shape_cast %15 : vector<1x16x16xbf16> to vector<16x16xbf16>
    %17 = vector.extract_strided_slice %5 {offsets = [0, 2], sizes = [16, 16], strides = [1, 1]} : vector<16x18xbf16> to vector<16x16xbf16>
    %cst_17 = arith.constant dense<0.000000e+00> : vector<16x16xf32>
    %18 = tpu.matmul %16, %17, %cst_17 {dimension_numbers = #tpu.dot_dimension_numbers<[1], [0], [0], [1], [0, 0, 1, 1], [], []>} : vector<16x16xbf16>, vector<16x16xbf16>, vector<16x16xf32> -> vector<16x16xf32>
    %19 = arith.addf %14, %18 : vector<16x16xf32>
    %c0_18 = arith.constant 0 : index
    %c0_19 = arith.constant 0 : index
    %20 = vector.load %arg3[%c0_18, %c0_19] : memref<16x1xf32, #tpu.memory_space<vmem>>, vector<16x1xf32>
    %21 = vector.broadcast %20 : vector<16x1xf32> to vector<16x16xf32>
    %22 = arith.addf %19, %21 : vector<16x16xf32>
    %23 = arith.truncf %22 : vector<16x16xf32> to vector<16x16xbf16>
    %c0_20 = arith.constant 0 : index
    %c0_21 = arith.constant 0 : index
    %c0_22 = arith.constant 0 : index
    %24 = vector.load %arg4[%c0_20, %c0_21, %c0_22] : memref<1x16x16xbf16, #tpu.memory_space<vmem>>, vector<1x16x16xbf16>
    %25 = vector.shape_cast %24 : vector<1x16x16xbf16> to vector<16x16xbf16>
    %26 = vector.shape_cast %23 : vector<16x16xbf16> to vector<1x16x16xbf16>
    tpu.vector_store %arg4[%c0_20, %c0_21, %c0_22], %26 {strides = array<i32>} : memref<1x16x16xbf16, #tpu.memory_space<vmem>>, vector<1x16x16xbf16>,
    return
  }
  func.func @transform_0(%arg0: i32) -> (i32, i32, i32) {
    %c0_i32 = arith.constant 0 : i32
    %c0_i32_0 = arith.constant 0 : i32
    %c0_i32_1 = arith.constant 0 : i32
    return %arg0, %c0_i32, %c0_i32_0 : i32, i32, i32
  }
  func.func @transform_1(%arg0: i32) -> (i32, i32, i32) {
    %c0_i32 = arith.constant 0 : i32
    %c0_i32_0 = arith.constant 0 : i32
    %c0_i32_1 = arith.constant 0 : i32
    %c0_i32_2 = arith.constant 0 : i32
    return %c0_i32, %c0_i32_0, %c0_i32_1 : i32, i32, i32
  }
  func.func @transform_2(%arg0: i32) -> (i32, i32) {
    %c0_i32 = arith.constant 0 : i32
    %c0_i32_0 = arith.constant 0 : i32
    %c0_i32_1 = arith.constant 0 : i32
    return %c0_i32, %c0_i32_0 : i32, i32
  }
  func.func @transform_3(%arg0: i32) -> (i32, i32, i32) {
    %c0_i32 = arith.constant 0 : i32
    %c0_i32_0 = arith.constant 0 : i32
    %c0_i32_1 = arith.constant 0 : i32
    return %arg0, %c0_i32, %c0_i32_0 : i32, i32, i32
  }
}

module attributes {stable_mosaic.version = 11 : i64} {
  func.func @_resblock_kernel(%arg0: i32, %arg1: memref<1x16x16xbf16, #tpu.memory_space<vmem>>, %arg2: memref<3x8x16xbf16, #tpu.memory_space<vmem>>, %arg3: memref<8x1xf32, #tpu.memory_space<vmem>>, %arg4: memref<1x16x8xbf16, #tpu.memory_space<vmem>>, %arg5: memref<16x1xf32, #tpu.memory_space<vmem>>, %arg6: memref<1x16x16xbf16, #tpu.memory_space<vmem>>, %arg7: memref<16x18xbf16, #tpu.memory_space<vmem>>) attributes {dimension_semantics = [#tpu.dimension_semantics<parallel>], iteration_bounds = array<i64: 2>, scalar_prefetch = 0 : i64, scratch_operands = 1 : i64, tpu.core_type = #tpu.core_type<tc>, window_params = [{transform_indices = @transform_0, window_bounds = array<i64: 1, 16, 16>}, {pipeline_mode = #tpu.pipeline_mode<synchronous>, transform_indices = @transform_1, window_bounds = array<i64: 3, 8, 16>}, {pipeline_mode = #tpu.pipeline_mode<synchronous>, transform_indices = @transform_2, window_bounds = array<i64: 8, 1>}, {pipeline_mode = #tpu.pipeline_mode<synchronous>, transform_indices = @transform_3, window_bounds = array<i64: 1, 16, 8>}, {pipeline_mode = #tpu.pipeline_mode<synchronous>, transform_indices = @transform_4, window_bounds = array<i64: 16, 1>}, {transform_indices = @transform_5, window_bounds = array<i64: 1, 16, 16>}]} {
    %c0 = arith.constant 0 : index
    %c0_0 = arith.constant 0 : index
    %c0_1 = arith.constant 0 : index
    %0 = vector.load %arg1[%c0, %c0_0, %c0_1] : memref<1x16x16xbf16, #tpu.memory_space<vmem>>, vector<1x16x16xbf16>
    %1 = vector.shape_cast %0 : vector<1x16x16xbf16> to vector<16x16xbf16>
    %2 = arith.extf %1 : vector<16x16xbf16> to vector<16x16xf32>
    %cst = arith.constant 0.000000e+00 : f32
    %3 = vector.broadcast %cst : f32 to vector<16x16xf32>
    %4 = arith.minimumf %2, %3 : vector<16x16xf32>
    %cst_2 = arith.constant 5.000000e-01 : f32
    %5 = vector.broadcast %cst_2 : f32 to vector<16x16xf32>
    %6 = arith.mulf %4, %5 : vector<16x16xf32>
    %7 = math.tanh %6 : vector<16x16xf32>
    %8 = math.exp %4 : vector<16x16xf32>
    %cst_3 = arith.constant 1.000000e+00 : f32
    %9 = vector.broadcast %cst_3 : f32 to vector<16x16xf32>
    %10 = arith.addf %8, %9 : vector<16x16xf32>
    %11 = arith.mulf %7, %10 : vector<16x16xf32>
    %cst_4 = arith.constant 0.000000e+00 : f32
    %12 = vector.broadcast %cst_4 : f32 to vector<16x16xf32>
    %13 = arith.cmpf ogt, %2, %12 : vector<16x16xf32>
    %14 = arith.select %13, %2, %11 : vector<16x16xi1>, vector<16x16xf32>
    %cst_5 = arith.constant 0.000000e+00 : bf16
    %15 = vector.broadcast %cst_5 : bf16 to vector<16x18xbf16>
    %c0_6 = arith.constant 0 : index
    %c0_7 = arith.constant 0 : index
    %16 = vector.load %arg7[%c0_6, %c0_7] : memref<16x18xbf16, #tpu.memory_space<vmem>>, vector<16x18xbf16>
    tpu.vector_store %arg7[%c0_6, %c0_7], %15 {strides = array<i32>} : memref<16x18xbf16, #tpu.memory_space<vmem>>, vector<16x18xbf16>,
    %17 = arith.truncf %14 : vector<16x16xf32> to vector<16x16xbf16>
    %c0_8 = arith.constant 0 : index
    %c1 = arith.constant 1 : index
    %18 = vector.load %arg7[%c0_8, %c1] : memref<16x18xbf16, #tpu.memory_space<vmem>>, vector<16x16xbf16>
    tpu.vector_store %arg7[%c0_8, %c1], %17 {strides = array<i32>} : memref<16x18xbf16, #tpu.memory_space<vmem>>, vector<16x16xbf16>,
    %c0_9 = arith.constant 0 : index
    %c0_10 = arith.constant 0 : index
    %19 = vector.load %arg7[%c0_9, %c0_10] : memref<16x18xbf16, #tpu.memory_space<vmem>>, vector<16x18xbf16>
    %c0_11 = arith.constant 0 : index
    %c0_12 = arith.constant 0 : index
    %c0_13 = arith.constant 0 : index
    %20 = vector.load %arg2[%c0_11, %c0_12, %c0_13] : memref<3x8x16xbf16, #tpu.memory_space<vmem>>, vector<1x8x16xbf16>
    %21 = vector.shape_cast %20 : vector<1x8x16xbf16> to vector<8x16xbf16>
    %22 = vector.extract_strided_slice %19 {offsets = [0, 0], sizes = [16, 16], strides = [1, 1]} : vector<16x18xbf16> to vector<16x16xbf16>
    %cst_14 = arith.constant dense<0.000000e+00> : vector<8x16xf32>
    %23 = tpu.matmul %21, %22, %cst_14 {dimension_numbers = #tpu.dot_dimension_numbers<[1], [0], [0], [1], [0, 0, 1, 1], [], []>} : vector<8x16xbf16>, vector<16x16xbf16>, vector<8x16xf32> -> vector<8x16xf32>
    %c1_15 = arith.constant 1 : index
    %c0_16 = arith.constant 0 : index
    %c0_17 = arith.constant 0 : index
    %24 = vector.load %arg2[%c1_15, %c0_16, %c0_17] : memref<3x8x16xbf16, #tpu.memory_space<vmem>>, vector<1x8x16xbf16>
    %25 = vector.shape_cast %24 : vector<1x8x16xbf16> to vector<8x16xbf16>
    %26 = vector.extract_strided_slice %19 {offsets = [0, 1], sizes = [16, 16], strides = [1, 1]} : vector<16x18xbf16> to vector<16x16xbf16>
    %cst_18 = arith.constant dense<0.000000e+00> : vector<8x16xf32>
    %27 = tpu.matmul %25, %26, %cst_18 {dimension_numbers = #tpu.dot_dimension_numbers<[1], [0], [0], [1], [0, 0, 1, 1], [], []>} : vector<8x16xbf16>, vector<16x16xbf16>, vector<8x16xf32> -> vector<8x16xf32>
    %28 = arith.addf %23, %27 : vector<8x16xf32>
    %c2 = arith.constant 2 : index
    %c0_19 = arith.constant 0 : index
    %c0_20 = arith.constant 0 : index
    %29 = vector.load %arg2[%c2, %c0_19, %c0_20] : memref<3x8x16xbf16, #tpu.memory_space<vmem>>, vector<1x8x16xbf16>
    %30 = vector.shape_cast %29 : vector<1x8x16xbf16> to vector<8x16xbf16>
    %31 = vector.extract_strided_slice %19 {offsets = [0, 2], sizes = [16, 16], strides = [1, 1]} : vector<16x18xbf16> to vector<16x16xbf16>
    %cst_21 = arith.constant dense<0.000000e+00> : vector<8x16xf32>
    %32 = tpu.matmul %30, %31, %cst_21 {dimension_numbers = #tpu.dot_dimension_numbers<[1], [0], [0], [1], [0, 0, 1, 1], [], []>} : vector<8x16xbf16>, vector<16x16xbf16>, vector<8x16xf32> -> vector<8x16xf32>
    %33 = arith.addf %28, %32 : vector<8x16xf32>
    %c0_22 = arith.constant 0 : index
    %c0_23 = arith.constant 0 : index
    %34 = vector.load %arg3[%c0_22, %c0_23] : memref<8x1xf32, #tpu.memory_space<vmem>>, vector<8x1xf32>
    %35 = vector.broadcast %34 : vector<8x1xf32> to vector<8x16xf32>
    %36 = arith.addf %33, %35 : vector<8x16xf32>
    %cst_24 = arith.constant 0.000000e+00 : f32
    %37 = vector.broadcast %cst_24 : f32 to vector<8x16xf32>
    %38 = arith.minimumf %36, %37 : vector<8x16xf32>
    %cst_25 = arith.constant 5.000000e-01 : f32
    %39 = vector.broadcast %cst_25 : f32 to vector<8x16xf32>
    %40 = arith.mulf %38, %39 : vector<8x16xf32>
    %41 = math.tanh %40 : vector<8x16xf32>
    %42 = math.exp %38 : vector<8x16xf32>
    %cst_26 = arith.constant 1.000000e+00 : f32
    %43 = vector.broadcast %cst_26 : f32 to vector<8x16xf32>
    %44 = arith.addf %42, %43 : vector<8x16xf32>
    %45 = arith.mulf %41, %44 : vector<8x16xf32>
    %cst_27 = arith.constant 0.000000e+00 : f32
    %46 = vector.broadcast %cst_27 : f32 to vector<8x16xf32>
    %47 = arith.cmpf ogt, %36, %46 : vector<8x16xf32>
    %48 = arith.select %47, %36, %45 : vector<8x16xi1>, vector<8x16xf32>
    %c0_28 = arith.constant 0 : index
    %c0_29 = arith.constant 0 : index
    %c0_30 = arith.constant 0 : index
    %49 = vector.load %arg4[%c0_28, %c0_29, %c0_30] : memref<1x16x8xbf16, #tpu.memory_space<vmem>>, vector<1x16x8xbf16>
    %50 = vector.shape_cast %49 : vector<1x16x8xbf16> to vector<16x8xbf16>
    %51 = arith.truncf %48 : vector<8x16xf32> to vector<8x16xbf16>
    %cst_31 = arith.constant dense<0.000000e+00> : vector<16x16xf32>
    %52 = tpu.matmul %50, %51, %cst_31 {dimension_numbers = #tpu.dot_dimension_numbers<[1], [0], [0], [1], [0, 0, 1, 1], [], []>} : vector<16x8xbf16>, vector<8x16xbf16>, vector<16x16xf32> -> vector<16x16xf32>
    %c0_32 = arith.constant 0 : index
    %c0_33 = arith.constant 0 : index
    %53 = vector.load %arg5[%c0_32, %c0_33] : memref<16x1xf32, #tpu.memory_space<vmem>>, vector<16x1xf32>
    %54 = vector.broadcast %53 : vector<16x1xf32> to vector<16x16xf32>
    %55 = arith.addf %52, %54 : vector<16x16xf32>
    %56 = arith.addf %55, %2 : vector<16x16xf32>
    %57 = arith.truncf %56 : vector<16x16xf32> to vector<16x16xbf16>
    %c0_34 = arith.constant 0 : index
    %c0_35 = arith.constant 0 : index
    %c0_36 = arith.constant 0 : index
    %58 = vector.load %arg6[%c0_34, %c0_35, %c0_36] : memref<1x16x16xbf16, #tpu.memory_space<vmem>>, vector<1x16x16xbf16>
    %59 = vector.shape_cast %58 : vector<1x16x16xbf16> to vector<16x16xbf16>
    %60 = vector.shape_cast %57 : vector<16x16xbf16> to vector<1x16x16xbf16>
    tpu.vector_store %arg6[%c0_34, %c0_35, %c0_36], %60 {strides = array<i32>} : memref<1x16x16xbf16, #tpu.memory_space<vmem>>, vector<1x16x16xbf16>,
    return
  }
  func.func @transform_0(%arg0: i32) -> (i32, i32, i32) {
    %c0_i32 = arith.constant 0 : i32
    %c0_i32_0 = arith.constant 0 : i32
    %c0_i32_1 = arith.constant 0 : i32
    return %arg0, %c0_i32, %c0_i32_0 : i32, i32, i32
  }
  func.func @transform_1(%arg0: i32) -> (i32, i32, i32) {
    %c0_i32 = arith.constant 0 : i32
    %c0_i32_0 = arith.constant 0 : i32
    %c0_i32_1 = arith.constant 0 : i32
    %c0_i32_2 = arith.constant 0 : i32
    return %c0_i32, %c0_i32_0, %c0_i32_1 : i32, i32, i32
  }
  func.func @transform_2(%arg0: i32) -> (i32, i32) {
    %c0_i32 = arith.constant 0 : i32
    %c0_i32_0 = arith.constant 0 : i32
    %c0_i32_1 = arith.constant 0 : i32
    return %c0_i32, %c0_i32_0 : i32, i32
  }
  func.func @transform_3(%arg0: i32) -> (i32, i32, i32) {
    %c0_i32 = arith.constant 0 : i32
    %c0_i32_0 = arith.constant 0 : i32
    %c0_i32_1 = arith.constant 0 : i32
    %c0_i32_2 = arith.constant 0 : i32
    return %c0_i32, %c0_i32_0, %c0_i32_1 : i32, i32, i32
  }
  func.func @transform_4(%arg0: i32) -> (i32, i32) {
    %c0_i32 = arith.constant 0 : i32
    %c0_i32_0 = arith.constant 0 : i32
    %c0_i32_1 = arith.constant 0 : i32
    return %c0_i32, %c0_i32_0 : i32, i32
  }
  func.func @transform_5(%arg0: i32) -> (i32, i32, i32) {
    %c0_i32 = arith.constant 0 : i32
    %c0_i32_0 = arith.constant 0 : i32
    %c0_i32_1 = arith.constant 0 : i32
    return %arg0, %c0_i32, %c0_i32_0 : i32, i32, i32
  }
}

module attributes {stable_mosaic.version = 11 : i64} {
  func.func @_resblock_kernel(%arg0: i32, %arg1: memref<1x16x16xbf16, #tpu.memory_space<vmem>>, %arg2: memref<3x8x16xbf16, #tpu.memory_space<vmem>>, %arg3: memref<8x1xf32, #tpu.memory_space<vmem>>, %arg4: memref<1x16x8xbf16, #tpu.memory_space<vmem>>, %arg5: memref<16x1xf32, #tpu.memory_space<vmem>>, %arg6: memref<1x16x16xbf16, #tpu.memory_space<vmem>>, %arg7: memref<16x20xbf16, #tpu.memory_space<vmem>>) attributes {dimension_semantics = [#tpu.dimension_semantics<parallel>], iteration_bounds = array<i64: 2>, scalar_prefetch = 0 : i64, scratch_operands = 1 : i64, tpu.core_type = #tpu.core_type<tc>, window_params = [{transform_indices = @transform_0, window_bounds = array<i64: 1, 16, 16>}, {pipeline_mode = #tpu.pipeline_mode<synchronous>, transform_indices = @transform_1, window_bounds = array<i64: 3, 8, 16>}, {pipeline_mode = #tpu.pipeline_mode<synchronous>, transform_indices = @transform_2, window_bounds = array<i64: 8, 1>}, {pipeline_mode = #tpu.pipeline_mode<synchronous>, transform_indices = @transform_3, window_bounds = array<i64: 1, 16, 8>}, {pipeline_mode = #tpu.pipeline_mode<synchronous>, transform_indices = @transform_4, window_bounds = array<i64: 16, 1>}, {transform_indices = @transform_5, window_bounds = array<i64: 1, 16, 16>}]} {
    %c0 = arith.constant 0 : index
    %c0_0 = arith.constant 0 : index
    %c0_1 = arith.constant 0 : index
    %0 = vector.load %arg1[%c0, %c0_0, %c0_1] : memref<1x16x16xbf16, #tpu.memory_space<vmem>>, vector<1x16x16xbf16>
    %1 = vector.shape_cast %0 : vector<1x16x16xbf16> to vector<16x16xbf16>
    %2 = arith.extf %1 : vector<16x16xbf16> to vector<16x16xf32>
    %cst = arith.constant 0.000000e+00 : f32
    %3 = vector.broadcast %cst : f32 to vector<16x16xf32>
    %4 = arith.minimumf %2, %3 : vector<16x16xf32>
    %cst_2 = arith.constant 5.000000e-01 : f32
    %5 = vector.broadcast %cst_2 : f32 to vector<16x16xf32>
    %6 = arith.mulf %4, %5 : vector<16x16xf32>
    %7 = math.tanh %6 : vector<16x16xf32>
    %8 = math.exp %4 : vector<16x16xf32>
    %cst_3 = arith.constant 1.000000e+00 : f32
    %9 = vector.broadcast %cst_3 : f32 to vector<16x16xf32>
    %10 = arith.addf %8, %9 : vector<16x16xf32>
    %11 = arith.mulf %7, %10 : vector<16x16xf32>
    %cst_4 = arith.constant 0.000000e+00 : f32
    %12 = vector.broadcast %cst_4 : f32 to vector<16x16xf32>
    %13 = arith.cmpf ogt, %2, %12 : vector<16x16xf32>
    %14 = arith.select %13, %2, %11 : vector<16x16xi1>, vector<16x16xf32>
    %cst_5 = arith.constant 0.000000e+00 : bf16
    %15 = vector.broadcast %cst_5 : bf16 to vector<16x20xbf16>
    %c0_6 = arith.constant 0 : index
    %c0_7 = arith.constant 0 : index
    %16 = vector.load %arg7[%c0_6, %c0_7] : memref<16x20xbf16, #tpu.memory_space<vmem>>, vector<16x20xbf16>
    tpu.vector_store %arg7[%c0_6, %c0_7], %15 {strides = array<i32>} : memref<16x20xbf16, #tpu.memory_space<vmem>>, vector<16x20xbf16>,
    %17 = arith.truncf %14 : vector<16x16xf32> to vector<16x16xbf16>
    %c0_8 = arith.constant 0 : index
    %c2 = arith.constant 2 : index
    %18 = vector.load %arg7[%c0_8, %c2] : memref<16x20xbf16, #tpu.memory_space<vmem>>, vector<16x16xbf16>
    tpu.vector_store %arg7[%c0_8, %c2], %17 {strides = array<i32>} : memref<16x20xbf16, #tpu.memory_space<vmem>>, vector<16x16xbf16>,
    %c0_9 = arith.constant 0 : index
    %c0_10 = arith.constant 0 : index
    %19 = vector.load %arg7[%c0_9, %c0_10] : memref<16x20xbf16, #tpu.memory_space<vmem>>, vector<16x20xbf16>
    %c0_11 = arith.constant 0 : index
    %c0_12 = arith.constant 0 : index
    %c0_13 = arith.constant 0 : index
    %20 = vector.load %arg2[%c0_11, %c0_12, %c0_13] : memref<3x8x16xbf16, #tpu.memory_space<vmem>>, vector<1x8x16xbf16>
    %21 = vector.shape_cast %20 : vector<1x8x16xbf16> to vector<8x16xbf16>
    %22 = vector.extract_strided_slice %19 {offsets = [0, 0], sizes = [16, 16], strides = [1, 1]} : vector<16x20xbf16> to vector<16x16xbf16>
    %cst_14 = arith.constant dense<0.000000e+00> : vector<8x16xf32>
    %23 = tpu.matmul %21, %22, %cst_14 {dimension_numbers = #tpu.dot_dimension_numbers<[1], [0], [0], [1], [0, 0, 1, 1], [], []>} : vector<8x16xbf16>, vector<16x16xbf16>, vector<8x16xf32> -> vector<8x16xf32>
    %c1 = arith.constant 1 : index
    %c0_15 = arith.constant 0 : index
    %c0_16 = arith.constant 0 : index
    %24 = vector.load %arg2[%c1, %c0_15, %c0_16] : memref<3x8x16xbf16, #tpu.memory_space<vmem>>, vector<1x8x16xbf16>
    %25 = vector.shape_cast %24 : vector<1x8x16xbf16> to vector<8x16xbf16>
    %26 = vector.extract_strided_slice %19 {offsets = [0, 2], sizes = [16, 16], strides = [1, 1]} : vector<16x20xbf16> to vector<16x16xbf16>
    %cst_17 = arith.constant dense<0.000000e+00> : vector<8x16xf32>
    %27 = tpu.matmul %25, %26, %cst_17 {dimension_numbers = #tpu.dot_dimension_numbers<[1], [0], [0], [1], [0, 0, 1, 1], [], []>} : vector<8x16xbf16>, vector<16x16xbf16>, vector<8x16xf32> -> vector<8x16xf32>
    %28 = arith.addf %23, %27 : vector<8x16xf32>
    %c2_18 = arith.constant 2 : index
    %c0_19 = arith.constant 0 : index
    %c0_20 = arith.constant 0 : index
    %29 = vector.load %arg2[%c2_18, %c0_19, %c0_20] : memref<3x8x16xbf16, #tpu.memory_space<vmem>>, vector<1x8x16xbf16>
    %30 = vector.shape_cast %29 : vector<1x8x16xbf16> to vector<8x16xbf16>
    %31 = vector.extract_strided_slice %19 {offsets = [0, 4], sizes = [16, 16], strides = [1, 1]} : vector<16x20xbf16> to vector<16x16xbf16>
    %cst_21 = arith.constant dense<0.000000e+00> : vector<8x16xf32>
    %32 = tpu.matmul %30, %31, %cst_21 {dimension_numbers = #tpu.dot_dimension_numbers<[1], [0], [0], [1], [0, 0, 1, 1], [], []>} : vector<8x16xbf16>, vector<16x16xbf16>, vector<8x16xf32> -> vector<8x16xf32>
    %33 = arith.addf %28, %32 : vector<8x16xf32>
    %c0_22 = arith.constant 0 : index
    %c0_23 = arith.constant 0 : index
    %34 = vector.load %arg3[%c0_22, %c0_23] : memref<8x1xf32, #tpu.memory_space<vmem>>, vector<8x1xf32>
    %35 = vector.broadcast %34 : vector<8x1xf32> to vector<8x16xf32>
    %36 = arith.addf %33, %35 : vector<8x16xf32>
    %cst_24 = arith.constant 0.000000e+00 : f32
    %37 = vector.broadcast %cst_24 : f32 to vector<8x16xf32>
    %38 = arith.minimumf %36, %37 : vector<8x16xf32>
    %cst_25 = arith.constant 5.000000e-01 : f32
    %39 = vector.broadcast %cst_25 : f32 to vector<8x16xf32>
    %40 = arith.mulf %38, %39 : vector<8x16xf32>
    %41 = math.tanh %40 : vector<8x16xf32>
    %42 = math.exp %38 : vector<8x16xf32>
    %cst_26 = arith.constant 1.000000e+00 : f32
    %43 = vector.broadcast %cst_26 : f32 to vector<8x16xf32>
    %44 = arith.addf %42, %43 : vector<8x16xf32>
    %45 = arith.mulf %41, %44 : vector<8x16xf32>
    %cst_27 = arith.constant 0.000000e+00 : f32
    %46 = vector.broadcast %cst_27 : f32 to vector<8x16xf32>
    %47 = arith.cmpf ogt, %36, %46 : vector<8x16xf32>
    %48 = arith.select %47, %36, %45 : vector<8x16xi1>, vector<8x16xf32>
    %c0_28 = arith.constant 0 : index
    %c0_29 = arith.constant 0 : index
    %c0_30 = arith.constant 0 : index
    %49 = vector.load %arg4[%c0_28, %c0_29, %c0_30] : memref<1x16x8xbf16, #tpu.memory_space<vmem>>, vector<1x16x8xbf16>
    %50 = vector.shape_cast %49 : vector<1x16x8xbf16> to vector<16x8xbf16>
    %51 = arith.truncf %48 : vector<8x16xf32> to vector<8x16xbf16>
    %cst_31 = arith.constant dense<0.000000e+00> : vector<16x16xf32>
    %52 = tpu.matmul %50, %51, %cst_31 {dimension_numbers = #tpu.dot_dimension_numbers<[1], [0], [0], [1], [0, 0, 1, 1], [], []>} : vector<16x8xbf16>, vector<8x16xbf16>, vector<16x16xf32> -> vector<16x16xf32>
    %c0_32 = arith.constant 0 : index
    %c0_33 = arith.constant 0 : index
    %53 = vector.load %arg5[%c0_32, %c0_33] : memref<16x1xf32, #tpu.memory_space<vmem>>, vector<16x1xf32>
    %54 = vector.broadcast %53 : vector<16x1xf32> to vector<16x16xf32>
    %55 = arith.addf %52, %54 : vector<16x16xf32>
    %56 = arith.addf %55, %2 : vector<16x16xf32>
    %cst_34 = arith.constant 0.000000e+00 : f32
    %57 = vector.broadcast %cst_34 : f32 to vector<16x16xf32>
    %58 = arith.minimumf %56, %57 : vector<16x16xf32>
    %cst_35 = arith.constant 5.000000e-01 : f32
    %59 = vector.broadcast %cst_35 : f32 to vector<16x16xf32>
    %60 = arith.mulf %58, %59 : vector<16x16xf32>
    %61 = math.tanh %60 : vector<16x16xf32>
    %62 = math.exp %58 : vector<16x16xf32>
    %cst_36 = arith.constant 1.000000e+00 : f32
    %63 = vector.broadcast %cst_36 : f32 to vector<16x16xf32>
    %64 = arith.addf %62, %63 : vector<16x16xf32>
    %65 = arith.mulf %61, %64 : vector<16x16xf32>
    %cst_37 = arith.constant 0.000000e+00 : f32
    %66 = vector.broadcast %cst_37 : f32 to vector<16x16xf32>
    %67 = arith.cmpf ogt, %56, %66 : vector<16x16xf32>
    %68 = arith.select %67, %56, %65 : vector<16x16xi1>, vector<16x16xf32>
    %69 = arith.truncf %68 : vector<16x16xf32> to vector<16x16xbf16>
    %c0_38 = arith.constant 0 : index
    %c0_39 = arith.constant 0 : index
    %c0_40 = arith.constant 0 : index
    %70 = vector.load %arg6[%c0_38, %c0_39, %c0_40] : memref<1x16x16xbf16, #tpu.memory_space<vmem>>, vector<1x16x16xbf16>
    %71 = vector.shape_cast %70 : vector<1x16x16xbf16> to vector<16x16xbf16>
    %72 = vector.shape_cast %69 : vector<16x16xbf16> to vector<1x16x16xbf16>
    tpu.vector_store %arg6[%c0_38, %c0_39, %c0_40], %72 {strides = array<i32>} : memref<1x16x16xbf16, #tpu.memory_space<vmem>>, vector<1x16x16xbf16>,
    return
  }
  func.func @transform_0(%arg0: i32) -> (i32, i32, i32) {
    %c0_i32 = arith.constant 0 : i32
    %c0_i32_0 = arith.constant 0 : i32
    %c0_i32_1 = arith.constant 0 : i32
    return %arg0, %c0_i32, %c0_i32_0 : i32, i32, i32
  }
  func.func @transform_1(%arg0: i32) -> (i32, i32, i32) {
    %c0_i32 = arith.constant 0 : i32
    %c0_i32_0 = arith.constant 0 : i32
    %c0_i32_1 = arith.constant 0 : i32
    %c0_i32_2 = arith.constant 0 : i32
    return %c0_i32, %c0_i32_0, %c0_i32_1 : i32, i32, i32
  }
  func.func @transform_2(%arg0: i32) -> (i32, i32) {
    %c0_i32 = arith.constant 0 : i32
    %c0_i32_0 = arith.constant 0 : i32
    %c0_i32_1 = arith.constant 0 : i32
    return %c0_i32, %c0_i32_0 : i32, i32
  }
  func.func @transform_3(%arg0: i32) -> (i32, i32, i32) {
    %c0_i32 = arith.constant 0 : i32
    %c0_i32_0 = arith.constant 0 : i32
    %c0_i32_1 = arith.constant 0 : i32
    %c0_i32_2 = arith.constant 0 : i32
    return %c0_i32, %c0_i32_0, %c0_i32_1 : i32, i32, i32
  }
  func.func @transform_4(%arg0: i32) -> (i32, i32) {
    %c0_i32 = arith.constant 0 : i32
    %c0_i32_0 = arith.constant 0 : i32
    %c0_i32_1 = arith.constant 0 : i32
    return %c0_i32, %c0_i32_0 : i32, i32
  }
  func.func @transform_5(%arg0: i32) -> (i32, i32, i32) {
    %c0_i32 = arith.constant 0 : i32
    %c0_i32_0 = arith.constant 0 : i32
    %c0_i32_1 = arith.constant 0 : i32
    return %arg0, %c0_i32, %c0_i32_0 : i32, i32, i32
  }
}

</mosaic_0001>

<bundles_post_ra>
// kernel: encoder_forward.6
= control target key start
LH: loop header
LB: loop body
LE: loop exit
PB: predicated region body
PF: predicated region fallthrough
CT: control target
= control target key end

     0   :  { %s689_s15 = smov 0   ;;  %s743_s0 = inlined_call_operand.vmem [shape: bf16[2,8,17], index: 0, kind: input, shape index: {}]   ;;  %s744_s1 = inlined_call_operand.vmem [shape: bf16[2,8,17], index: 1, kind: input, shape index: {}]   ;;  %s745_s2 = inlined_call_operand.vmem [shape: bf16[4,16,8], index: 2, kind: input, shape index: {}]   ;;  %s746_s3 = inlined_call_operand.vmem [shape: f32[16,1], index: 3, kind: input, shape index: {}]   ;;  %s747_s4 = inlined_call_operand.vmem [shape: bf16[2,16,16], index: 4, kind: output, shape index: {}]  }
   0x1 LB: > { %s560_s16 = sadd.s32 4294967295, %s658_s15   ;;  %p564_p0 = scmp.ge.s32.totalorder %s658_s15, 1  ;;  %s658_s15 = sphi %s689_s15, %s14_s15  }
   0x2   : > { %p170_p1 = scmp.lt.s32.totalorder %s658_s15, 3 }
   0x4   : > { %p171_p2 = pnand %p564_p0, %p170_p1 }
   0x5   : > { %p199_p3 = scmp.lt.s32.totalorder (!%p171_p2), %s560_s16, 1  ;;  %v660_v0 = vmov (!%p171_p2), 0.0   ;;  %vm661_vm0 = vmmov (!%p171_p2), 0   ;;  %vm229_vm1 = vcmask (!%p171_p2), 1043456   ;;  %v662_v1 = vmov (!%p171_p2), 0   ;;  %v450_v2 = vld [vmem:[%s746_s3] sm:$0xff] (!%p171_p2) }
   0x6   : > { %174 = sbr.rel (%p171_p2) target bundleno = 383 (0x17f), region = 36  ;;  %600 = vmatprep.subr.bf16.mxu0 (!%p171_p2), %v660_v0  ;;  %602 = vmatprep.mubr.msk.bf16.mxu0 (!%p171_p2), %vm661_vm0, %v660_v0  ;;  %v640_v7 = vld [vmem:[%s745_s2 + $0x8] sm:$0xff] (!%p171_p2)   ;;  %v641_v9 = vld [vmem:[%s745_s2] sm:$0xff] (!%p171_p2)   ;;  %vm225_vm2 = vcmask (!%p171_p2), 64512   ;;  %s663_s6 = smov (!%p171_p2), 127   ;;  %v642_v14 = vld [vmem:[%s745_s2 + $0x10] sm:$0xff] (!%p171_p2)  }
   0x7   : > { %606 = vmatprep.subr.bf16.mxu1 (!%p171_p2), %v660_v0  ;;  %608 = vmatprep.mubr.msk.bf16.mxu1 (!%p171_p2), %vm661_vm0, %v660_v0  ;;  %v451_v10 = vld [vmem:[%s746_s3 + $0x8] sm:$0xff] (!%p171_p2)  ;;  %v643_v17 = vld [vmem:[%s745_s2 + $0x18] sm:$0xff] (!%p171_p2)   ;;  %vm490_vm4 = vcmask (!%p171_p2), 125952  }
   0x8   : > { %636 = vset.pattern.permute.xlu1 (!%p171_p2), %v662_v1  ;;  %637 = vset.pattern.permute.xlu0 (!%p171_p2), %v662_v1 }
   0x9   : > { %454 = vperm.xlu1 (!%p171_p2), %636, %v450_v2  }
   0xd   : > { %s749_s16 = smov (!%p199_p3, %s560_s16), 1  ;;  %459 = vperm.xlu1 %636, %v451_v10  }
   0xe   : > { %s565_s17 = sshll.u32 %s749_s16, 2  ;;  %s589_s11 = sshll.u32 %s749_s16, 3 }
   0xf   : > { %s202_s20 = scalar_lea.vmem %s743_s0, %s565_s17  ;;  %s206_s23 = scalar_lea.vmem %s744_s1, %s565_s17 }
  0x10   : > { %v213_v3 = vld [vmem:[%s202_s20] sm:$0xf]  ;;  %s211_s14 = scalar_lea.vmem %s747_s4, %s589_s11 }
  0x11   : > { %v214_v4 = vld [vmem:[%s206_s23] sm:$0xf]  ;;  %v578_v5 = vcombine.low %v213_v3, %v213_v3  ;;  %v283_v8 = vsel %vm229_vm1, %v213_v3, 0 }
  0x12   : > { %v231_v6 = vsel %vm229_vm1, %v214_v4, 0  ;;  %607 = vmatpush3.bf16.msra.mxu1 %v283_v8  ;;  %v583_v11 = vcombine.low %v214_v4, %v214_v4 }
  0x13   : > { %601 = vmatpush3.bf16.msra.mxu0 %v231_v6  ;;  %337 = vrot.lane.b32.xlu0 %v578_v5, %s663_s6 }
  0x14   : > { %612 = vmatprep.subr.bf16.mxu0 %v660_v0  ;;  %618 = vmatprep.subr.bf16.mxu1 %v660_v0 }
  0x15   : > { %609 = vmatmul.mubr.msk.bf16.vlgmr.msra.gmra.mrb[0].mxu1 %vm225_vm2, %v641_v9 }
  0x16   : > { %603 = vmatmul.mubr.msk.bf16.vlgmr.msra.gmra.mrb[0].mxu0 %vm225_vm2, %v640_v7  ;;  %620 = vmatprep.mubr.msk.bf16.mxu1 %vm661_vm0, %v660_v0 }
  0x17   : > { %614 = vmatprep.mubr.msk.bf16.mxu0 %vm661_vm0, %v660_v0  ;;  %399 = vrot.lane.b32.xlu0 %v583_v11, %s663_s6 }
  0x85   : > { %v338_v12 = vpop.permute.xlu0 %337 }
  0x86   : > { %v343_v13 = vsel %vm229_vm1, %v338_v12, 0 }
  0x87   : > { %613 = vmatpush3.bf16.msra.mxu0 %v343_v13 }
  0x88   : > { %v455_v32 = vpop.permute.xlu1 %454 }
  0x89   : > { %v400_v15 = vpop.permute.xlu0 %399 }
  0x8a   : > { %v405_v16 = vsel %vm229_vm1, %v400_v15, 0  ;;  %615 = vmatmul.mubr.msk.bf16.vlgmr.msra.gmra.mrb[4].mxu0 %vm225_vm2, %v642_v14 }
  0x8b   : > { %619 = vmatpush3.bf16.msra.mxu1 %v405_v16 }
  0x8c   : > { %v460_v42 = vpop.permute.xlu1 %459 }
  0x8e   : > { %621 = vmatmul.mubr.msk.bf16.vlgmr.msra.gmra.mrb[4].mxu1 %vm225_vm2, %v643_v17 }
  0xe8   : > { %v319_v19 = vpop.f32.mrb[0].mxu1 }
  0xe9   : > { %v267_v18 = vpop.f32.mrb[0].mxu0  ;;  %v610_v22 = vpop.f32.mrb[1].mxu1 }
  0xea   : > { %v604_v20 = vpop.f32.mrb[1].mxu0  ;;  %v320_v21 = vadd.f32 %v319_v19, %v267_v18  ;;  %v322_v24 = vpop.f32.mrb[2].mxu1 }
  0xeb   : > { %v270_v23 = vpop.f32.mrb[2].mxu0  ;;  %v611_v27 = vpop.f32.mrb[3].mxu1 }
  0xec   : > { %v605_v25 = vpop.f32.mrb[3].mxu0  ;;  %v323_v26 = vadd.f32 %v322_v24, %v270_v23 }
 0x15d   : > { %v379_v28 = vpop.f32.mrb[4].mxu0 }
 0x15e   : > { %v386_v29 = vadd.f32 %v379_v28, %v320_v21  ;;  %v616_v30 = vpop.f32.mrb[5].mxu0 }
 0x15f   : > { %v382_v31 = vpop.f32.mrb[6].mxu0 }
 0x160   : > { %v387_v33 = vadd.f32 %v382_v31, %v323_v26  ;;  %v617_v34 = vpop.f32.mrb[7].mxu0 }
 0x161   : > { %v441_v35 = vpop.f32.mrb[4].mxu1 }
 0x162   : > { %v448_v36 = vadd.f32 %v441_v35, %v386_v29  ;;  %v622_v37 = vpop.f32.mrb[5].mxu1 }
 0x163   : > { %v444_v38 = vpop.f32.mrb[6].mxu1 }
 0x164   : > { %v462_v39 = vadd.f32 %v455_v32, %v448_v36  ;;  %v449_v40 = vadd.f32 %v444_v38, %v387_v33  ;;  %v623_v41 = vpop.f32.mrb[7].mxu1 }
 0x166   : > { %v464_v43 = vmin.f32 %v462_v39, 0.0  ;;  %v463_v44 = vadd.f32 %v460_v42, %v449_v40  ;;  %vm478_vm3 = vcmp.gt.f32.partialorder %v462_v39, 0.0 }
 0x168   : > { %v466_v45 = vmul.f32 0.5, %v464_v43  ;;  %v470_v46 = vmul.f32 1.442695, %v464_v43  ;;  %v465_v47 = vmin.f32 %v463_v44, 0.0  ;;  %vm479_vm5 = vcmp.gt.f32.partialorder %v463_v44, 0.0 }
 0x16a   : > { %v472_v48 = vmul.f32 1.442695, %v465_v47  ;;  %644 = vpow2.f32 %v470_v46  ;;  %v467_v49 = vmul.f32 0.5, %v465_v47 }
 0x16b   : > { %646 = vtanh.f32 %v466_v45 }
 0x16c   : > { %648 = vpow2.f32 %v472_v48 }
 0x16d   : > { %650 = vtanh.f32 %v467_v49 }
 0x174   : > { %v645_v50 = vpop.eup %644 }
 0x175   : > { %v647_v51 = vpop.eup %646  ;;  %v474_v52 = vadd.f32 1.0, %v645_v50 }
 0x176   : > { %v649_v53 = vpop.eup %648 }
 0x177   : > { %v476_v54 = vmul.f32 %v647_v51, %v474_v52  ;;  %v475_v55 = vadd.f32 1.0, %v649_v53  ;;  %v651_v56 = vpop.eup %650 }
 0x179   : > { %v480_v57 = vsel %vm478_vm3, %v462_v39, %v476_v54  ;;  %v477_v58 = vmul.f32 %v651_v56, %v475_v55 }
 0x17a   : > { %v590_v59 = vpack.c.bf16 %v480_v57, %v480_v57 }
 0x17b   : > { %v481_v60 = vsel %vm479_vm5, %v463_v44, %v477_v58 }
 0x17c   : > { %491 = vst.msk [vmem:[%s211_s14] sm:$0xf] %vm490_vm4, %v590_v59  ;;  %v591_v61 = vpack.c.bf16 %v481_v60, %v481_v60 }
 0x17e   : > { %492 = vst.msk [vmem:[%s211_s14 + $0x4] sm:$0xf] %vm490_vm4, %v591_v61 }
 0x17f PF: > { %s14_s15 = sadd.s32 1, %s658_s15  }
 0x180   : > { %p11_p4 = scmp.ge.s32.totalorder %s14_s15, 4  }
 0x182   :  { %13 = sbr.rel (!%p11_p4) target bundleno = 1 (0x1), region = 72 }

// kernel: encoder_forward.5
= control target key start
LH: loop header
LB: loop body
LE: loop exit
PB: predicated region body
PF: predicated region fallthrough
CT: control target
= control target key end

     0   :  { %s617_s15 = smov 0   ;;  %s660_s0 = inlined_call_operand.vmem [shape: bf16[2,16,33], index: 0, kind: input, shape index: {}]   ;;  %s661_s1 = inlined_call_operand.vmem [shape: bf16[2,16,33], index: 1, kind: input, shape index: {}]   ;;  %s662_s2 = inlined_call_operand.vmem [shape: bf16[4,8,16], index: 2, kind: input, shape index: {}]   ;;  %s663_s3 = inlined_call_operand.vmem [shape: f32[8,1], index: 3, kind: input, shape index: {}]   ;;  %s664_s4 = inlined_call_operand.vmem [shape: bf16[2,8,32], index: 4, kind: output, shape index: {}]  }
   0x1 LB: > { %s505_s16 = sadd.s32 4294967295, %s586_s15   ;;  %p509_p0 = scmp.ge.s32.totalorder %s586_s15, 1  ;;  %s586_s15 = sphi %s617_s15, %s14_s15  }
   0x2   : > { %p172_p1 = scmp.lt.s32.totalorder %s586_s15, 3 }
   0x4   : > { %p173_p2 = pnand %p509_p0, %p172_p1 }
   0x5   : > { %p202_p3 = scmp.lt.s32.totalorder (!%p173_p2), %s505_s16, 1  ;;  %v588_v0 = vmov (!%p173_p2), 0.0   ;;  %vm589_vm0 = vmmov (!%p173_p2), 0   ;;  %v421_v1 = vld [vmem:[%s663_s3] sm:$0xff] (!%p173_p2)  ;;  %v590_v2 = vmov (!%p173_p2), 0   ;;  %s591_s26 = smov (!%p173_p2), 127  }
   0x6   : > { %176 = sbr.rel (%p173_p2) target bundleno = 378 (0x17a), region = 36  ;;  %536 = vmatprep.subr.bf16.mxu0 (!%p173_p2), %v588_v0  ;;  %538 = vmatprep.mubr.msk.bf16.mxu0 (!%p173_p2), %vm589_vm0, %v588_v0  ;;  %v221_v5 = vld [vmem:[%s662_s2] sm:$0xf] (!%p173_p2)  ;;  %v515_v6 = vld [vmem:[%s662_s2 + $0x4] sm:$0xf] (!%p173_p2)  ;;  %vm230_vm1 = vcmask (!%p173_p2), 130048  }
   0x7   : > { %542 = vmatprep.subr.bf16.mxu1 (!%p173_p2), %v588_v0  ;;  %544 = vmatprep.mubr.msk.bf16.mxu1 (!%p173_p2), %vm589_vm0, %v588_v0  ;;  %v520_v8 = vld [vmem:[%s662_s2 + $0x8] sm:$0xf] (!%p173_p2)  ;;  %v522_v10 = vld [vmem:[%s662_s2 + $0xc] sm:$0xf] (!%p173_p2)  ;;  %vm438_vm3 = vcmask (!%p173_p2), 257024  }
   0x8   : > { %572 = vset.pattern.permute.xlu1 (!%p173_p2), %v590_v2  ;;  %573 = vset.pattern.permute.xlu0 (!%p173_p2), %v590_v2 }
   0x9   : > { %424 = vperm.xlu1 (!%p173_p2), %572, %v421_v1  }
   0xd   : > { %s666_s16 = smov (!%p202_p3, %s505_s16), 1 }
   0xe   : > { %s526_s19 = sshll.u32 %s666_s16, 3  ;;  %s514_s9 = sshll.u32 %s666_s16, 2 }
   0xf   : > { %s206_s22 = scalar_lea.vmem %s660_s0, %s526_s19  ;;  %s211_s25 = scalar_lea.vmem %s661_s1, %s526_s19 }
  0x10   : > { %v574_v3 = vld [vmem:[%s206_s22] sm:$0xff]   ;;  %s215_s12 = scalar_lea.vmem %s664_s4, %s514_s9 }
  0x11   : > { %v575_v4 = vld [vmem:[%s211_s25] sm:$0xff]   ;;  %325 = vrot.lane.b32.xlu0 %v574_v3, %s591_s26  ;;  %543 = vmatpush3.bf16.msra.mxu1 %v574_v3 }
  0x12   : > { %537 = vmatpush3.bf16.msra.mxu0 %v575_v4  ;;  %554 = vmatprep.subr.bf16.mxu1 %v588_v0 }
  0x13   : > { %548 = vmatprep.subr.bf16.mxu0 %v588_v0 }
  0x14   : > { %545 = vmatmul.mubr.msk.bf16.vlgmr.msra.gmra.mrb[0].mxu1 %vm230_vm1, %v221_v5 }
  0x15   : > { %374 = vrot.lane.b32.xlu0 %v575_v4, %s591_s26  ;;  %539 = vmatmul.mubr.msk.bf16.vlgmr.msra.gmra.mrb[0].mxu0 %vm230_vm1, %v515_v6 }
  0x16   : > { %550 = vmatprep.mubr.msk.bf16.mxu0 %vm589_vm0, %v588_v0  ;;  %556 = vmatprep.mubr.msk.bf16.mxu1 %vm589_vm0, %v588_v0 }
  0x83   : > { %v326_v7 = vpop.permute.xlu0 %325 }
  0x84   : > { %549 = vmatpush3.bf16.msra.mxu0 %v326_v7 }
  0x87   : > { %v375_v9 = vpop.permute.xlu0 %374  ;;  %551 = vmatmul.mubr.msk.bf16.vlgmr.msra.gmra.mrb[4].mxu0 %vm230_vm1, %v520_v8 }
  0x88   : > { %555 = vmatpush3.bf16.msra.mxu1 %v375_v9  ;;  %v425_v26 = vpop.permute.xlu1 %424 }
  0x8b   : > { %557 = vmatmul.mubr.msk.bf16.vlgmr.msra.gmra.mrb[4].mxu1 %vm230_vm1, %v522_v10 }
  0xe7   : > { %v317_v11 = vpop.f32.mrb[0].mxu1 }
  0xe8   : > { %v268_v12 = vpop.f32.mrb[0].mxu0  ;;  %v546_v13 = vpop.f32.mrb[1].mxu1 }
  0xe9   : > { %v540_v14 = vpop.f32.mrb[1].mxu0  ;;  %v318_v15 = vadd.f32 %v317_v11, %v268_v12  ;;  %v320_v16 = vpop.f32.mrb[2].mxu1 }
  0xea   : > { %v271_v17 = vpop.f32.mrb[2].mxu0  ;;  %v547_v18 = vpop.f32.mrb[3].mxu1 }
  0xeb   : > { %v541_v19 = vpop.f32.mrb[3].mxu0 }
 0x15a   : > { %v365_v20 = vpop.f32.mrb[4].mxu0 }
 0x15b   : > { %v371_v21 = vadd.f32 %v365_v20, %v318_v15  ;;  %v552_v22 = vpop.f32.mrb[5].mxu0 }
 0x15c   : > { %v368_v23 = vpop.f32.mrb[6].mxu0 }
 0x15d   : > { %v553_v24 = vpop.f32.mrb[7].mxu0 }
 0x15e   : > { %v414_v25 = vpop.f32.mrb[4].mxu1 }
 0x15f   : > { %v420_v27 = vadd.f32 %v414_v25, %v371_v21  ;;  %v558_v28 = vpop.f32.mrb[5].mxu1 }
 0x160   : > { %v417_v29 = vpop.f32.mrb[6].mxu1 }
 0x161   : > { %v427_v30 = vadd.f32 %v425_v26, %v420_v27  ;;  %v559_v31 = vpop.f32.mrb[7].mxu1 }
 0x163   : > { %v428_v32 = vmin.f32 %v427_v30, 0.0  ;;  %vm435_vm2 = vcmp.gt.f32.partialorder %v427_v30, 0.0 }
 0x165   : > { %v431_v33 = vmul.f32 1.442695, %v428_v32  ;;  %v429_v34 = vmul.f32 0.5, %v428_v32 }
 0x167   : > { %576 = vpow2.f32 %v431_v33 }
 0x168   : > { %578 = vtanh.f32 %v429_v34 }
 0x171   : > { %v577_v35 = vpop.eup %576 }
 0x172   : > { %v433_v36 = vadd.f32 1.0, %v577_v35  ;;  %v579_v37 = vpop.eup %578 }
 0x174   : > { %v434_v38 = vmul.f32 %v579_v37, %v433_v36 }
 0x176   : > { %v436_v39 = vsel %vm435_vm2, %v427_v30, %v434_v38 }
 0x177   : > { %v437_v40 = vpack.c.bf16 %v436_v39, %v436_v39 }
 0x179   : > { %439 = vst.msk [vmem:[%s215_s12] sm:$0xf] %vm438_vm3, %v437_v40 }
 0x17a PF: > { %s14_s15 = sadd.s32 1, %s586_s15  }
 0x17b   : > { %p11_p4 = scmp.ge.s32.totalorder %s14_s15, 4  }
 0x17d   :  { %13 = sbr.rel (!%p11_p4) target bundleno = 1 (0x1), region = 72 }

// kernel: encoder_forward.7
= control target key start
LH: loop header
LB: loop body
LE: loop exit
PB: predicated region body
PF: predicated region fallthrough
CT: control target
= control target key end

     0   :  { %s538_s12 = smov 0   ;;  %s580_s0 = inlined_call_operand.vmem [shape: bf16[2,16,16], index: 0, kind: input, shape index: {}]   ;;  %s581_s1 = inlined_call_operand.vmem [shape: bf16[3,16,16], index: 1, kind: input, shape index: {}]   ;;  %s582_s2 = inlined_call_operand.vmem [shape: f32[16,1], index: 2, kind: input, shape index: {}]   ;;  %s583_s3 = inlined_call_operand.vmem [shape: bf16[2,16,16], index: 3, kind: output, shape index: {}]  }
   0x1 LB: > { %s432_s13 = sadd.s32 4294967295, %s510_s12   ;;  %p436_p0 = scmp.ge.s32.totalorder %s510_s12, 1  ;;  %s510_s12 = sphi %s538_s12, %s13_s12  }
   0x2   : > { %p137_p1 = scmp.lt.s32.totalorder %s510_s12, 3 }
   0x4   : > { %p138_p2 = pnand %p436_p0, %p137_p1 }
   0x5   : > { %p161_p3 = scmp.lt.s32.totalorder (!%p138_p2), %s432_s13, 1  ;;  %vm172_vm0 = vcmask (!%p138_p2), 146432   ;;  %v512_v0 = vmov (!%p138_p2), 0   ;;  %v513_v1 = vmov (!%p138_p2), 0.0   ;;  %s514_s18 = smov (!%p138_p2), 1   ;;  %vm515_vm1 = vmmov (!%p138_p2), 0  }
   0x6   : > { %141 = sbr.rel (%p138_p2) target bundleno = 487 (0x1e7), region = 32  ;;  %173 = vst.msk [vmem:[#allocation2] sm:$0xff] (!%p138_p2), %vm172_vm0, %v512_v0  ;;  %472 = vmatprep.subr.bf16.mxu1 (!%p138_p2), %v513_v1  ;;  %466 = vmatprep.subr.bf16.mxu0 (!%p138_p2), %v513_v1  ;;  %vm184_vm2 = vcmask (!%p138_p2), 138248   ;;  %s516_s19 = smov (!%p138_p2), 126   ;;  %v502_v5 = vld [vmem:[%s581_s1] sm:$0xff] (!%p138_p2)   ;;  %vm201_vm3 = vcmask (!%p138_p2), 130048  }
   0x7   : > { %498 = vset.pattern.permute.xlu1 (!%p138_p2), %v512_v0  ;;  %499 = vset.pattern.permute.xlu0 (!%p138_p2), %v512_v0  ;;  %s517_s20 = smov (!%p138_p2), 127   ;;  %v352_v6 = vld [vmem:[%s582_s2] sm:$0xff] (!%p138_p2)  ;;  %v353_v7 = vld [vmem:[%s582_s2 + $0x8] sm:$0xff] (!%p138_p2)  ;;  %v503_v11 = vld [vmem:[%s581_s1 + $0x10] sm:$0xff] (!%p138_p2)   ;;  %vm374_vm4 = vcmask (!%p138_p2), 125952  }
   0x8   : > { %468 = vmatprep.mubr.msk.bf16.mxu0 (!%p138_p2), %vm515_vm1, %v513_v1  ;;  %474 = vmatprep.mubr.msk.bf16.mxu1 (!%p138_p2), %vm515_vm1, %v513_v1  ;;  %v501_v9 = vld [vmem:[%s581_s1 + $0x8] sm:$0xff] (!%p138_p2)  }
   0xd   : > { %s585_s13 = smov (!%p161_p3, %s432_s13), 1 }
   0xe   : > { %s456_s14 = sshll.u32 %s585_s13, 3 }
   0xf   : > { %s165_s17 = scalar_lea.vmem %s580_s0, %s456_s14  ;;  %s170_s6 = scalar_lea.vmem %s583_s3, %s456_s14 }
  0x10   : > { %v500_v2 = vld [vmem:[%s165_s17] sm:$0xff]  }
  0x11   : > { %181 = vrot.lane.b32.xlu0 %v500_v2, %s514_s18 }
  0x83   : > { %v182_v3 = vpop.permute.xlu0 %181 }
  0x84   : > { %185 = vst.msk [vmem:[#allocation2] sm:$0xff] %vm184_vm2, %v182_v3 }
  0x8b   : > { %v186_v4 = vld [vmem:[#allocation2] sm:$0xff] }
  0x8c   : > { %303 = vrot.lane.b32.xlu1 %v186_v4, %s516_s19  ;;  %198 = vrot.lane.b32.xlu0 %v186_v4, %s517_s20 }
  0x8d   : > { %473 = vmatpush3.bf16.msra.mxu1 %v186_v4 }
  0x90   : > { %475 = vmatmul.mubr.msk.bf16.vlgmr.msra.gmra.mrb[0].mxu1 %vm201_vm3, %v502_v5  ;;  %356 = vperm.xlu1 %498, %v352_v6  }
  0x91   : > { %361 = vperm.xlu0 %499, %v353_v7  }
  0xfe   : > { %v199_v8 = vpop.permute.xlu0 %198  ;;  %v304_v10 = vpop.permute.xlu1 %303 }
  0xff   : > { %467 = vmatpush3.bf16.msra.mxu0 %v199_v8 }
 0x100   : > { %478 = vmatprep.subr.bf16.mxu0 %v513_v1 }
 0x102   : > { %469 = vmatmul.mubr.msk.bf16.vlgmr.msra.gmra.mrb[0].mxu0 %vm201_vm3, %v501_v9 }
 0x103   : > { %479 = vmatpush3.bf16.msra.mxu0 %v304_v10  ;;  %480 = vmatprep.mubr.msk.bf16.mxu0 %vm515_vm1, %v513_v1 }
 0x10a   : > { %481 = vmatmul.mubr.msk.bf16.vlgmr.msra.gmra.mrb[4].mxu0 %vm201_vm3, %v503_v11 }
 0x10f   : > { %v357_v23 = vpop.permute.xlu1 %356 }
 0x110   : > { %v362_v27 = vpop.permute.xlu0 %361 }
 0x163   : > { %v288_v12 = vpop.f32.mrb[0].mxu1 }
 0x164   : > { %v476_v13 = vpop.f32.mrb[1].mxu1 }
 0x165   : > { %v291_v14 = vpop.f32.mrb[2].mxu1 }
 0x166   : > { %v477_v15 = vpop.f32.mrb[3].mxu1 }
 0x1d5   : > { %v239_v16 = vpop.f32.mrb[0].mxu0 }
 0x1d6   : > { %v289_v17 = vadd.f32 %v288_v12, %v239_v16  ;;  %v470_v18 = vpop.f32.mrb[1].mxu0 }
 0x1d7   : > { %v242_v19 = vpop.f32.mrb[2].mxu0 }
 0x1d8   : > { %v292_v20 = vadd.f32 %v291_v14, %v242_v19  ;;  %v471_v21 = vpop.f32.mrb[3].mxu0 }
 0x1dd   : > { %v343_v22 = vpop.f32.mrb[4].mxu0 }
 0x1de   : > { %v350_v24 = vadd.f32 %v343_v22, %v289_v17  ;;  %v482_v25 = vpop.f32.mrb[5].mxu0 }
 0x1df   : > { %v346_v26 = vpop.f32.mrb[6].mxu0 }
 0x1e0   : > { %v364_v28 = vadd.f32 %v357_v23, %v350_v24  ;;  %v351_v29 = vadd.f32 %v346_v26, %v292_v20  ;;  %v483_v30 = vpop.f32.mrb[7].mxu0 }
 0x1e2   : > { %v458_v31 = vpack.c.bf16 %v364_v28, %v364_v28  ;;  %v365_v32 = vadd.f32 %v362_v27, %v351_v29 }
 0x1e4   : > { %375 = vst.msk [vmem:[%s170_s6] sm:$0xf] %vm374_vm4, %v458_v31  ;;  %v459_v33 = vpack.c.bf16 %v365_v32, %v365_v32 }
 0x1e6   : > { %376 = vst.msk [vmem:[%s170_s6 + $0x4] sm:$0xf] %vm374_vm4, %v459_v33 }
 0x1e7 PF: > { %s13_s12 = sadd.s32 1, %s510_s12  }
 0x1e8   : > { %p10_p4 = scmp.ge.s32.totalorder %s13_s12, 4  }
 0x1ea   :  { %12 = sbr.rel (!%p10_p4) target bundleno = 1 (0x1), region = 64 }

// kernel: encoder_forward.8
= control target key start
LH: loop header
LB: loop body
LE: loop exit
PB: predicated region body
PF: predicated region fallthrough
CT: control target
= control target key end

     0   :  { %s687_s18 = smov 0   ;;  %s751_s0 = inlined_call_operand.vmem [shape: bf16[2,16,16], index: 0, kind: input, shape index: {}]   ;;  %s752_s1 = inlined_call_operand.vmem [shape: bf16[3,8,16], index: 1, kind: input, shape index: {}]   ;;  %s753_s2 = inlined_call_operand.vmem [shape: f32[8,1], index: 2, kind: input, shape index: {}]   ;;  %s754_s3 = inlined_call_operand.vmem [shape: bf16[1,16,8], index: 3, kind: input, shape index: {}]   ;;  %s755_s4 = inlined_call_operand.vmem [shape: f32[16,1], index: 4, kind: input, shape index: {}]   ;;  %s756_s5 = inlined_call_operand.vmem [shape: bf16[2,16,16], index: 5, kind: output, shape index: {}]  }
   0x1 LB: > { %s554_s19 = sadd.s32 4294967295, %s649_s18   ;;  %p558_p0 = scmp.ge.s32.totalorder %s649_s18, 1  ;;  %s649_s18 = sphi %s687_s18, %s15_s18  }
   0x2   : > { %p187_p1 = scmp.lt.s32.totalorder %s649_s18, 3 }
   0x4   : > { %p188_p2 = pnand %p558_p0, %p187_p1 }
   0x5   : > { %p215_p3 = scmp.lt.s32.totalorder (!%p188_p2), %s554_s19, 1  ;;  %vm248_vm0 = vcmask (!%p188_p2), 146432   ;;  %v651_v0 = vmov (!%p188_p2), 0   ;;  %v652_v10 = vmov (!%p188_p2), 0.0   ;;  %s653_s24 = smov (!%p188_p2), 1   ;;  %vm654_vm3 = vmmov (!%p188_p2), 0  }
   0x6   : > { %191 = sbr.rel (%p188_p2) target bundleno = 756 (0x2f4), region = 40  ;;  %249 = vst.msk [vmem:[#allocation2] sm:$0xff] (!%p188_p2), %vm248_vm0, %v651_v0  ;;  %628 = vset.pattern.permute.xlu1 (!%p188_p2), %v651_v0  ;;  %629 = vset.pattern.permute.xlu0 (!%p188_p2), %v651_v0  ;;  %vm255_vm4 = vcmask (!%p188_p2), 138248   ;;  %s655_s25 = smov (!%p188_p2), 126   ;;  %vm265_vm5 = vcmask (!%p188_p2), 130048   ;;  %v401_v25 = vld [vmem:[%s753_s2] sm:$0xff] (!%p188_p2) }
   0x7   : > { %596 = vmatprep.subr.bf16.mxu1 (!%p188_p2), %v652_v10  ;;  %590 = vmatprep.subr.bf16.mxu0 (!%p188_p2), %v652_v10  ;;  %s656_s26 = smov (!%p188_p2), 127   ;;  %v258_v24 = vld [vmem:[%s752_s1] sm:$0xf] (!%p188_p2)  ;;  %v421_v26 = vld [vmem:[%s755_s4 + $0x8] sm:$0xff] (!%p188_p2)  ;;  %v563_v28 = vld [vmem:[%s752_s1 + $0x4] sm:$0xf] (!%p188_p2) }
   0x8   : > { %592 = vmatprep.mubr.msk.bf16.mxu0 (!%p188_p2), %vm654_vm3, %v652_v10  ;;  %598 = vmatprep.mubr.msk.bf16.mxu1 (!%p188_p2), %vm654_vm3, %v652_v10  ;;  %v566_v30 = vld [vmem:[%s752_s1 + $0x8] sm:$0xf] (!%p188_p2)  ;;  %v420_v35 = vld [vmem:[%s755_s4] sm:$0xff] (!%p188_p2)  ;;  %vm441_vm7 = vcmask (!%p188_p2), 1043456   ;;  %vm437_vm8 = vcmask (!%p188_p2), 64512   ;;  %vm496_vm9 = vcmask (!%p188_p2), 125952  }
   0x9   : > { %v630_v58 = vld [vmem:[%s754_s3] sm:$0xff] (!%p188_p2)  }
   0xd   : > { %s758_s19 = smov (!%p215_p3, %s554_s19), 1 }
   0xe   : > { %s574_s20 = sshll.u32 %s758_s19, 3 }
   0xf   : > { %s219_s23 = scalar_lea.vmem %s751_s0, %s574_s20  ;;  %s224_s21 = scalar_lea.vmem %s756_s5, %s574_s20 }
  0x10   : > { %v579_v1 = vld [vmem:[%s219_s23] sm:$0xff]  }
  0x11   : > { %v703_v2 = vunpack.c.l.bf16 %v579_v1  ;;  %v705_v3 = vunpack.c.h.bf16 %v579_v1 }
  0x13   : > { %v230_v4 = vmin.f32 %v703_v2, 0.0  ;;  %v231_v5 = vmin.f32 %v705_v3, 0.0  ;;  %vm244_vm1 = vcmp.gt.f32.partialorder %v703_v2, 0.0  ;;  %vm245_vm2 = vcmp.gt.f32.partialorder %v705_v3, 0.0 }
  0x15   : > { %v232_v6 = vmul.f32 0.5, %v230_v4  ;;  %v233_v7 = vmul.f32 0.5, %v231_v5  ;;  %v236_v8 = vmul.f32 1.442695, %v230_v4  ;;  %v238_v9 = vmul.f32 1.442695, %v231_v5 }
  0x17   : > { %631 = vtanh.f32 %v232_v6 }
  0x18   : > { %633 = vtanh.f32 %v233_v7 }
  0x19   : > { %635 = vpow2.f32 %v236_v8 }
  0x1a   : > { %637 = vpow2.f32 %v238_v9 }
  0x21   : > { %v632_v11 = vpop.eup %631 }
  0x22   : > { %v634_v12 = vpop.eup %633 }
  0x23   : > { %v636_v13 = vpop.eup %635 }
  0x24   : > { %v638_v14 = vpop.eup %637  ;;  %v240_v15 = vadd.f32 1.0, %v636_v13 }
  0x25   : > { %v241_v16 = vadd.f32 1.0, %v638_v14 }
  0x26   : > { %v242_v17 = vmul.f32 %v632_v11, %v240_v15 }
  0x27   : > { %v243_v18 = vmul.f32 %v634_v12, %v241_v16 }
  0x28   : > { %v246_v19 = vsel %vm244_vm1, %v703_v2, %v242_v17 }
  0x29   : > { %v247_v20 = vsel %vm245_vm2, %v705_v3, %v243_v18 }
  0x2a   : > { %v250_v21 = vpack.c.bf16 %v247_v20, %v246_v19 }
  0x2c   : > { %252 = vrot.lane.b32.xlu0 %v250_v21, %s653_s24 }
  0x9e   : > { %v253_v22 = vpop.permute.xlu0 %252 }
  0x9f   : > { %256 = vst.msk [vmem:[#allocation2] sm:$0xff] %vm255_vm4, %v253_v22 }
  0xa6   : > { %v257_v23 = vld [vmem:[#allocation2] sm:$0xff] }
  0xa7   : > { %354 = vrot.lane.b32.xlu1 %v257_v23, %s655_s25  ;;  %262 = vrot.lane.b32.xlu0 %v257_v23, %s656_s26 }
  0xa8   : > { %597 = vmatpush3.bf16.msra.mxu1 %v257_v23 }
  0xa9   : > { %608 = vmatprep.subr.bf16.mxu1 %v652_v10 }
  0xab   : > { %599 = vmatmul.mubr.msk.bf16.vlgmr.msra.gmra.mrb[0].mxu1 %vm265_vm5, %v258_v24  ;;  %404 = vperm.xlu1 %628, %v401_v25  }
  0xac   : > { %610 = vmatprep.mubr.msk.bf16.mxu1 %vm654_vm3, %v652_v10  ;;  %424 = vperm.xlu0 %629, %v420_v35  }
  0xaf   : > { %429 = vperm.xlu1 %628, %v421_v26  }
 0x119   : > { %v263_v27 = vpop.permute.xlu0 %262  ;;  %v355_v29 = vpop.permute.xlu1 %354 }
 0x11a   : > { %591 = vmatpush3.bf16.msra.mxu0 %v263_v27 }
 0x11b   : > { %602 = vmatprep.subr.bf16.mxu0 %v652_v10 }
 0x11d   : > { %593 = vmatmul.mubr.msk.bf16.vlgmr.msra.gmra.mrb[0].mxu0 %vm265_vm5, %v563_v28 }
 0x11e   : > { %603 = vmatpush3.bf16.msra.mxu0 %v355_v29  ;;  %604 = vmatprep.mubr.msk.bf16.mxu0 %vm654_vm3, %v652_v10 }
 0x125   : > { %605 = vmatmul.mubr.msk.bf16.vlgmr.msra.gmra.mrb[4].mxu0 %vm265_vm5, %v566_v30 }
 0x12a   : > { %v405_v44 = vpop.permute.xlu1 %404 }
 0x12b   : > { %v425_v59 = vpop.permute.xlu0 %424 }
 0x12e   : > { %v430_v63 = vpop.permute.xlu1 %429 }
 0x17e   : > { %v346_v31 = vpop.f32.mrb[0].mxu1 }
 0x17f   : > { %v600_v32 = vpop.f32.mrb[1].mxu1 }
 0x180   : > { %v349_v33 = vpop.f32.mrb[2].mxu1 }
 0x181   : > { %v601_v34 = vpop.f32.mrb[3].mxu1 }
 0x1f0   : > { %v303_v36 = vpop.f32.mrb[0].mxu0 }
 0x1f1   : > { %v347_v37 = vadd.f32 %v346_v31, %v303_v36  ;;  %v594_v38 = vpop.f32.mrb[1].mxu0 }
 0x1f2   : > { %v306_v39 = vpop.f32.mrb[2].mxu0 }
 0x1f3   : > { %v595_v40 = vpop.f32.mrb[3].mxu0 }
 0x1f8   : > { %v394_v41 = vpop.f32.mrb[4].mxu0 }
 0x1f9   : > { %v400_v42 = vadd.f32 %v394_v41, %v347_v37  ;;  %v606_v43 = vpop.f32.mrb[5].mxu0 }
 0x1fa   : > { %v397_v45 = vpop.f32.mrb[6].mxu0 }
 0x1fb   : > { %v407_v46 = vadd.f32 %v405_v44, %v400_v42  ;;  %v607_v47 = vpop.f32.mrb[7].mxu0 }
 0x1fd   : > { %v408_v48 = vmin.f32 %v407_v46, 0.0  ;;  %vm415_vm6 = vcmp.gt.f32.partialorder %v407_v46, 0.0 }
 0x1ff   : > { %v411_v49 = vmul.f32 1.442695, %v408_v48  ;;  %v409_v50 = vmul.f32 0.5, %v408_v48 }
 0x201   : > { %639 = vpow2.f32 %v411_v49 }
 0x202   : > { %641 = vtanh.f32 %v409_v50 }
 0x20b   : > { %v640_v51 = vpop.eup %639 }
 0x20c   : > { %v413_v52 = vadd.f32 1.0, %v640_v51  ;;  %v642_v53 = vpop.eup %641 }
 0x20e   : > { %v414_v54 = vmul.f32 %v642_v53, %v413_v52 }
 0x210   : > { %v416_v55 = vsel %vm415_vm6, %v407_v46, %v414_v54 }
 0x211   : > { %v419_v56 = vpack.c.bf16 %v416_v55, %v416_v55 }
 0x213   : > { %v443_v57 = vsel %vm441_vm7, %v419_v56, 0 }
 0x214   : > { %609 = vmatpush3.bf16.msra.mxu1 %v443_v57 }
 0x217   : > { %611 = vmatmul.mubr.msk.bf16.vlgmr.msra.gmra.mrb[4].mxu1 %vm437_vm8, %v630_v58 }
 0x2ea   : > { %v479_v60 = vpop.f32.mrb[4].mxu1 }
 0x2eb   : > { %v612_v61 = vpop.f32.mrb[5].mxu1  ;;  %v480_v62 = vadd.f32 %v479_v60, %v425_v59 }
 0x2ec   : > { %v482_v0 = vpop.f32.mrb[6].mxu1 }
 0x2ed   : > { %v483_v1 = vadd.f32 %v482_v0, %v430_v63  ;;  %v486_v4 = vadd.f32 %v703_v2, %v480_v62  ;;  %v613_v5 = vpop.f32.mrb[7].mxu1 }
 0x2ef   : > { %v487_v6 = vadd.f32 %v705_v3, %v483_v1  ;;  %v576_v7 = vpack.c.bf16 %v486_v4, %v486_v4 }
 0x2f1   : > { %v577_v8 = vpack.c.bf16 %v487_v6, %v487_v6  ;;  %497 = vst.msk [vmem:[%s224_s21] sm:$0xf] %vm496_vm9, %v576_v7 }
 0x2f3   : > { %498 = vst.msk [vmem:[%s224_s21 + $0x4] sm:$0xf] %vm496_vm9, %v577_v8 }
 0x2f4 PF: > { %s15_s18 = sadd.s32 1, %s649_s18  }
 0x2f5   : > { %p12_p4 = scmp.ge.s32.totalorder %s15_s18, 4  }
 0x2f7   :  { %14 = sbr.rel (!%p12_p4) target bundleno = 1 (0x1), region = 72 }

// kernel: encoder_forward.9
= control target key start
LH: loop header
LB: loop body
LE: loop exit
PB: predicated region body
PF: predicated region fallthrough
CT: control target
= control target key end

     0   :  { %10 = vsyncpa [#allocation4], 0  ;;  %s968_s0 = inlined_call_operand.vmem [shape: bf16[2,16,16], index: 0, kind: input, shape index: {}]   ;;  %s969_s1 = inlined_call_operand.vmem [shape: bf16[3,8,16], index: 1, kind: input, shape index: {}]   ;;  %s970_s2 = inlined_call_operand.vmem [shape: f32[8,1], index: 2, kind: input, shape index: {}]   ;;  %s971_s3 = inlined_call_operand.vmem [shape: bf16[1,16,8], index: 3, kind: input, shape index: {}]   ;;  %s972_s4 = inlined_call_operand.vmem [shape: f32[16,1], index: 4, kind: input, shape index: {}]   ;;  %s973_s5 = inlined_call_operand.hbm [shape: bf16[2,16,16], index: 5, kind: output, shape index: {}]  }
   0x1   :  { %12 = vsyncpa [#allocation4 + $0x1], 0  ;;  %s825_s18 = smov 0   ;;  %s827_s19 = smov 0  }
   0x2   :  { %s829_s20 = smov 0   ;;  %s831_s21 = smov 0  }
   0x3 LB: > { %s846_s22 = sadd.s32 4294967295, %s784_s21   ;;  %s591_s23 = sadd.s32 4294967294, %s784_s21   ;;  %s784_s21 = sphi %s831_s21, %s979_s21   ;;  %s780_s20 = sphi %s829_s20, %s978_s20   ;;  %s776_s19 = sphi %s827_s19, %s977_s19   ;;  %s772_s18 = sphi %s825_s18, %s976_s18  }
   0x4   : > { %s850_s24 = sadd.s32 1, %s784_s21   ;;  %s135_s25 = sadd.s32 1, %s780_s20 }
   0x5   : > { %s132_s26 = ssub.s32 %s784_s21, %s850_s24  ;;  %p145_p0 = scmp.ne.s32.totalorder %s780_s20, %s776_s19 }
   0x6   : > { %p133_p1 = scmp.eq.s32.totalorder %s132_s26, 0  ;;  %p146_p2 = scmp.eq.s32.totalorder %s846_s22, 1 }
   0x7   : > { %p151_p3 = scmp.ne.s32.totalorder %s776_s19, %s772_s18  ;;  %p152_p4 = scmp.eq.s32.totalorder %s591_s23, 1 }
   0x8   : > { %s861_s27 = scalar_select %p133_p1, %s780_s20, %s135_s25  }
   0x9   : > { %p863_p5 = por %p146_p2, %p145_p0  ;;  %p867_p6 = por %p152_p4, %p151_p3 }
   0xa   : > { %p594_p7 = scmp.ge.s32.totalorder %s784_s21, 1  ;;  %p190_p8 = scmp.lt.s32.totalorder %s784_s21, 3 }
   0xc   : > { %p191_p9 = pnand %p594_p7, %p190_p8 }
   0xd   : > { %p218_p10 = scmp.lt.s32.totalorder (!%p191_p9), %s846_s22, 1  ;;  %vm246_vm0 = vcmask (!%p191_p9), 162816   ;;  %v786_v0 = vmov (!%p191_p9), 0   ;;  %v787_v10 = vmov (!%p191_p9), 0.0   ;;  %s788_s10 = smov (!%p191_p9), 2   ;;  %vm789_vm3 = vmmov (!%p191_p9), 0  }
   0xe   : > { %194 = sbr.rel (%p191_p9) target bundleno = 799 (0x31f), region = 40  ;;  %247 = vst.msk [vmem:[#allocation2] sm:$0xff] (!%p191_p9), %vm246_vm0, %v786_v0  ;;  %699 = vset.pattern.permute.xlu1 (!%p191_p9), %v786_v0  ;;  %700 = vset.pattern.permute.xlu0 (!%p191_p9), %v786_v0  ;;  %vm253_vm4 = vcmask (!%p191_p9), 146448   ;;  %s790_s11 = smov (!%p191_p9), 124   ;;  %vm263_vm5 = vcmask (!%p191_p9), 130048   ;;  %v399_v25 = vld [vmem:[%s970_s2] sm:$0xff] (!%p191_p9) }
   0xf   : > { %634 = vmatprep.subr.bf16.mxu1 (!%p191_p9), %v787_v10  ;;  %628 = vmatprep.subr.bf16.mxu0 (!%p191_p9), %v787_v10  ;;  %s791_s12 = smov (!%p191_p9), 126   ;;  %v256_v24 = vld [vmem:[%s969_s1] sm:$0xf] (!%p191_p9)  ;;  %v419_v26 = vld [vmem:[%s972_s4 + $0x8] sm:$0xff] (!%p191_p9)  ;;  %v598_v28 = vld [vmem:[%s969_s1 + $0x4] sm:$0xf] (!%p191_p9) }
  0x10   : > { %630 = vmatprep.mubr.msk.bf16.mxu0 (!%p191_p9), %vm789_vm3, %v787_v10  ;;  %636 = vmatprep.mubr.msk.bf16.mxu1 (!%p191_p9), %vm789_vm3, %v787_v10  ;;  %v601_v30 = vld [vmem:[%s969_s1 + $0x8] sm:$0xf] (!%p191_p9)  ;;  %v418_v35 = vld [vmem:[%s972_s4] sm:$0xff] (!%p191_p9)  ;;  %vm439_vm7 = vcmask (!%p191_p9), 1043456   ;;  %vm435_vm8 = vcmask (!%p191_p9), 64512   ;;  %s615_s13 = sshll.u32 (!%p191_p9), %s846_s22, 7 }
  0x11   : > { %v701_v58 = vld [vmem:[%s971_s3] sm:$0xff] (!%p191_p9)   ;;  %vm512_vm10 = vcmask (!%p191_p9), 125952   ;;  %s923_s23 = scalar_lea.hbm (!%p191_p9), %s973_s5, %s615_s13  ;;  %s792_s26 = smov (!%p191_p9), [#allocation3]  }
  0x15   : > { %s219_s30 = scalar_select %p218_p10, %s846_s22, 1 }
  0x17   : > { %s612_s6 = sshll.u32 %s219_s30, 3  ;;  %s726_s30 = sshll.u32 %s792_s26, 4  ;;  %s727_s30 = int_to_ptr.vmem [resolvable:$false] %s726_s30 }
  0x18   : > { %s222_s9 = scalar_lea.vmem %s968_s0, %s612_s6  ;;  %s728_s6 = scalar_lea.vmem %s727_s30, 256 }
  0x19   : > { %v617_v1 = vld [vmem:[%s222_s9] sm:$0xff]  }
  0x1a   : > { %v878_v2 = vunpack.c.l.bf16 %v617_v1  ;;  %v880_v3 = vunpack.c.h.bf16 %v617_v1 }
  0x1c   : > { %v228_v4 = vmin.f32 %v878_v2, 0.0  ;;  %v229_v5 = vmin.f32 %v880_v3, 0.0  ;;  %vm242_vm1 = vcmp.gt.f32.partialorder %v878_v2, 0.0  ;;  %vm243_vm2 = vcmp.gt.f32.partialorder %v880_v3, 0.0 }
  0x1e   : > { %v230_v6 = vmul.f32 0.5, %v228_v4  ;;  %v231_v7 = vmul.f32 0.5, %v229_v5  ;;  %v234_v8 = vmul.f32 1.442695, %v228_v4  ;;  %v236_v9 = vmul.f32 1.442695, %v229_v5 }
  0x20   : > { %702 = vtanh.f32 %v230_v6 }
  0x21   : > { %704 = vtanh.f32 %v231_v7 }
  0x22   : > { %706 = vpow2.f32 %v234_v8 }
  0x23   : > { %708 = vpow2.f32 %v236_v9 }
  0x2a   : > { %v703_v11 = vpop.eup %702 }
  0x2b   : > { %v705_v12 = vpop.eup %704 }
  0x2c   : > { %v707_v13 = vpop.eup %706 }
  0x2d   : > { %v709_v14 = vpop.eup %708  ;;  %v238_v15 = vadd.f32 1.0, %v707_v13 }
  0x2e   : > { %v239_v16 = vadd.f32 1.0, %v709_v14 }
  0x2f   : > { %v240_v17 = vmul.f32 %v703_v11, %v238_v15 }
  0x30   : > { %v241_v18 = vmul.f32 %v705_v12, %v239_v16 }
  0x31   : > { %v244_v19 = vsel %vm242_vm1, %v878_v2, %v240_v17 }
  0x32   : > { %v245_v20 = vsel %vm243_vm2, %v880_v3, %v241_v18 }
  0x33   : > { %v248_v21 = vpack.c.bf16 %v245_v20, %v244_v19 }
  0x35   : > { %250 = vrot.lane.b32.xlu0 %v248_v21, %s788_s10 }
  0xa7   : > { %v251_v22 = vpop.permute.xlu0 %250 }
  0xa8   : > { %254 = vst.msk [vmem:[#allocation2] sm:$0xff] %vm253_vm4, %v251_v22 }
  0xaf   : > { %v255_v23 = vld [vmem:[#allocation2] sm:$0xff] }
  0xb0   : > { %352 = vrot.lane.b32.xlu1 %v255_v23, %s790_s11  ;;  %260 = vrot.lane.b32.xlu0 %v255_v23, %s791_s12  ;;  %s215_s11 = sand.u32 1, %s776_s19  }
  0xb1   : > { %635 = vmatpush3.bf16.msra.mxu1 %v255_v23  ;;  %s595_s12 = sshll.u32 %s215_s11, 3  ;;  %s927_s22 = scalar_lea.sflag [#allocation4], %s215_s11 }
  0xb2   : > { %646 = vmatprep.subr.bf16.mxu1 %v787_v10  ;;  %s217_s14 = scalar_lea.vmem [#allocation3], %s595_s12 }
  0xb3   : > { %s529_s15 = sshll.u32 %s217_s14, 4  ;;  %s925_s15 = int_to_ptr.vmem [resolvable:$true] %s529_s15 }
  0xb4   : > { %637 = vmatmul.mubr.msk.bf16.vlgmr.msra.gmra.mrb[0].mxu1 %vm263_vm5, %v256_v24  ;;  %402 = vperm.xlu1 %699, %v399_v25   ;;  %s722_s25 = scalar_lea.vmem %s925_s15, 128  ;;  %p729_p0 = scmp.lt.s32.totalorder %s925_s15, %s727_s30 }
  0xb5   : > { %648 = vmatprep.mubr.msk.bf16.mxu1 %vm789_vm3, %v787_v10  ;;  %422 = vperm.xlu0 %700, %v418_v35   ;;  %p723_p11 = scmp.ne.s32.totalorder %s925_s15, %s722_s25  ;;  %p730_p1 = scmp.lt.s32.totalorder %s728_s6, %s722_s25 }
  0xb7   : > { %p724_p12 = pnand %p723_p11, %p863_p5  ;;  %p731_p2 = por %p730_p1, %p729_p0 }
  0xb8   : > { %427 = vperm.xlu1 %699, %v419_v26  }
  0xb9   : > { %p725_p13 = pneg %p724_p12 }
  0xbb   : > { %p732_p3 = pnand %p731_p2, %p725_p13 }
 0x122   : > { %v261_v27 = vpop.permute.xlu0 %260  ;;  %v353_v29 = vpop.permute.xlu1 %352 }
 0x123   : > { %629 = vmatpush3.bf16.msra.mxu0 %v261_v27 }
 0x124   : > { %640 = vmatprep.subr.bf16.mxu0 %v787_v10 }
 0x126   : > { %631 = vmatmul.mubr.msk.bf16.vlgmr.msra.gmra.mrb[0].mxu0 %vm263_vm5, %v598_v28 }
 0x127   : > { %641 = vmatpush3.bf16.msra.mxu0 %v353_v29  ;;  %642 = vmatprep.mubr.msk.bf16.mxu0 %vm789_vm3, %v787_v10 }
 0x12e   : > { %643 = vmatmul.mubr.msk.bf16.vlgmr.msra.gmra.mrb[4].mxu0 %vm263_vm5, %v601_v30 }
 0x133   : > { %v403_v44 = vpop.permute.xlu1 %402 }
 0x134   : > { %v423_v59 = vpop.permute.xlu0 %422 }
 0x137   : > { %v428_v63 = vpop.permute.xlu1 %427 }
 0x187   : > { %v344_v31 = vpop.f32.mrb[0].mxu1 }
 0x188   : > { %v638_v32 = vpop.f32.mrb[1].mxu1 }
 0x189   : > { %v347_v33 = vpop.f32.mrb[2].mxu1 }
 0x18a   : > { %v639_v34 = vpop.f32.mrb[3].mxu1 }
 0x1f9   : > { %v301_v36 = vpop.f32.mrb[0].mxu0 }
 0x1fa   : > { %v345_v37 = vadd.f32 %v344_v31, %v301_v36  ;;  %v632_v38 = vpop.f32.mrb[1].mxu0 }
 0x1fb   : > { %v304_v39 = vpop.f32.mrb[2].mxu0 }
 0x1fc   : > { %v633_v40 = vpop.f32.mrb[3].mxu0 }
 0x201   : > { %v392_v41 = vpop.f32.mrb[4].mxu0 }
 0x202   : > { %v398_v42 = vadd.f32 %v392_v41, %v345_v37  ;;  %v644_v43 = vpop.f32.mrb[5].mxu0 }
 0x203   : > { %v395_v45 = vpop.f32.mrb[6].mxu0 }
 0x204   : > { %v405_v46 = vadd.f32 %v403_v44, %v398_v42  ;;  %v645_v47 = vpop.f32.mrb[7].mxu0 }
 0x206   : > { %v406_v48 = vmin.f32 %v405_v46, 0.0  ;;  %vm413_vm6 = vcmp.gt.f32.partialorder %v405_v46, 0.0 }
 0x208   : > { %v409_v49 = vmul.f32 1.442695, %v406_v48  ;;  %v407_v50 = vmul.f32 0.5, %v406_v48 }
 0x20a   : > { %710 = vpow2.f32 %v409_v49 }
 0x20b   : > { %712 = vtanh.f32 %v407_v50 }
 0x214   : > { %v711_v51 = vpop.eup %710 }
 0x215   : > { %v411_v52 = vadd.f32 1.0, %v711_v51  ;;  %v713_v53 = vpop.eup %712 }
 0x217   : > { %v412_v54 = vmul.f32 %v713_v53, %v411_v52 }
 0x219   : > { %v414_v55 = vsel %vm413_vm6, %v405_v46, %v412_v54 }
 0x21a   : > { %v417_v56 = vpack.c.bf16 %v414_v55, %v414_v55 }
 0x21c   : > { %v441_v57 = vsel %vm439_vm7, %v417_v56, 0 }
 0x21d   : > { %647 = vmatpush3.bf16.msra.mxu1 %v441_v57 }
 0x220   : > { %649 = vmatmul.mubr.msk.bf16.vlgmr.msra.gmra.mrb[4].mxu1 %vm435_vm8, %v701_v58 }
 0x2f3   : > { %v477_v60 = vpop.f32.mrb[4].mxu1 }
 0x2f4   : > { %v478_v61 = vadd.f32 %v477_v60, %v423_v59  ;;  %v650_v62 = vpop.f32.mrb[5].mxu1 }
 0x2f5   : > { %v480_v0 = vpop.f32.mrb[6].mxu1 }
 0x2f6   : > { %v484_v1 = vadd.f32 %v878_v2, %v478_v61  ;;  %v481_v4 = vadd.f32 %v480_v0, %v428_v63  ;;  %v651_v5 = vpop.f32.mrb[7].mxu1 }
 0x2f8   : > { %v486_v6 = vmin.f32 %v484_v1, 0.0  ;;  %v485_v7 = vadd.f32 %v880_v3, %v481_v4  ;;  %vm500_vm9 = vcmp.gt.f32.partialorder %v484_v1, 0.0 }
 0x2fa   : > { %v488_v8 = vmul.f32 0.5, %v486_v6  ;;  %v492_v9 = vmul.f32 1.442695, %v486_v6  ;;  %v487_v10 = vmin.f32 %v485_v7, 0.0  ;;  %vm501_vm11 = vcmp.gt.f32.partialorder %v485_v7, 0.0 }
 0x2fc   : > { %v494_v11 = vmul.f32 1.442695, %v487_v10  ;;  %714 = vpow2.f32 %v492_v9  ;;  %v489_v12 = vmul.f32 0.5, %v487_v10 }
 0x2fd   : > { %716 = vtanh.f32 %v488_v8 }
 0x2fe   : > { %718 = vpow2.f32 %v494_v11 }
 0x2ff   : > { %720 = vtanh.f32 %v489_v12 }
 0x306   : > { %v715_v13 = vpop.eup %714 }
 0x307   : > { %v717_v14 = vpop.eup %716  ;;  %v496_v2 = vadd.f32 1.0, %v715_v13 }
 0x308   : > { %v719_v15 = vpop.eup %718 }
 0x309   : > { %v498_v16 = vmul.f32 %v717_v14, %v496_v2  ;;  %v497_v17 = vadd.f32 1.0, %v719_v15  ;;  %v721_v18 = vpop.eup %720 }
 0x30b   : > { %v502_v3 = vsel %vm500_vm9, %v484_v1, %v498_v16  ;;  %v499_v19 = vmul.f32 %v721_v18, %v497_v17 }
 0x30c   : > { %v613_v20 = vpack.c.bf16 %v502_v3, %v502_v3 }
 0x30d   : > { %v503_v21 = vsel %vm501_vm11, %v485_v7, %v499_v19 }
 0x30e   : > { %v614_v22 = vpack.c.bf16 %v503_v21, %v503_v21  ;;  %513 = vst.msk [vmem:[%s217_s14] sm:$0xf] %vm512_vm10, %v613_v20 }
 0x310   : > { %514 = vst.msk [vmem:[%s217_s14 + $0x4] sm:$0xf] %vm512_vm10, %v614_v22 }
 0x311   : > { %735 = shalt.err (!%p732_p3)
}
 0x312   : > { %s736_s7 = scalar_lea.hbm %s923_s23, 128  ;;  %s740_s10 = scalar_lea.hbm %s973_s5, 256 }
 0x313   : > { %p737_p4 = scmp.ne.s32.totalorder %s923_s23, %s736_s7  ;;  %p741_p9 = scmp.lt.u32.totalorder %s923_s23, %s973_s5 }
 0x314   : > { %p742_p10 = scmp.lt.u32.totalorder %s740_s10, %s736_s7  ;;  %p744_p12 = scmp.lt.u32.totalorder %s736_s7, %s923_s23 }
 0x315   : > { %p738_p7 = pnand %p737_p4, %p863_p5 }
 0x316   : > { %p743_p11 = por %p742_p10, %p741_p9 }
 0x317   : > { %p739_p8 = pneg %p738_p7 }
 0x318   : > { %p745_p13 = por %p744_p12, %p743_p11 }
 0x31a   : > { %p746_p0 = pnand %p745_p13, %p739_p8 }
 0x31c   : > { %749 = shalt.err (!%p746_p0)
}
 0x31d   : > { %s793_s13 = smov 64   ;;  %s794_s14 = smov 4  }
 0x31e   : > { %652 = dma.vmem_to_hbm [thread:$0]  (%p863_p5), %s925_s15, 128, %s923_s23, %s927_s22, %s793_s13, %s793_s13, %s794_s14  }
 0x31f PF: > { %p658_p1 = scmp.ge.s32.totalorder %s784_s21, 2  ;;  %s544_s16 = sand.u32 1, %s772_s18  }
 0x320   : > { %s545_s17 = scalar_lea.sflag [#allocation4], %s544_s16 }
 0x321   : > { %p655_p2 = pnand %p658_p1, %p867_p6 }
 0x323   : > { %767 = dma.done.wait (!%p655_p2), %s545_s17, 128  }
 0x324   : > { %769 = vsyncadd (!%p655_p2), %s545_s17, 4294967168  ;;  %p15_p3 = scmp.ge.s32.totalorder %s850_s24, 4   ;;  %s976_s18 = smov %s776_s19 }
 0x325   : > { %s977_s19 = smov %s780_s20  ;;  %s978_s20 = smov %s861_s27 }
 0x326   : > { %s979_s21 = smov %s850_s24  ;;  %17 = sbr.rel (!%p15_p3) target bundleno = 3 (0x3), region = 77 }
 0x32d   :  { %550 = vsyncpa [#allocation4], 1 }
 0x32e   :  { %552 = vsyncpa [#allocation4 + $0x1], 1 }

</bundles_post_ra>
